<compile_context>
chip_gen: v6e
topology: v6e:2x2x1
jax: 0.10.0
libtpu: 0.0.40
codegen_flags: <defaults>
</compile_context>

<pallas_src>
import functools

import jax
import jax.numpy as jnp
from jax import lax
from jax.experimental import pallas as pl
from jax.experimental.pallas import tpu as pltpu


# ----------------------------- fused Pallas kernel -----------------------------

def _mv2_fused_kernel(*refs, H, W, C_in, C_hid, C_out, B, stride, use_res, has_expand):
    """Fused MV2 block; one grid step == B batch elements.

    refs (has_expand=True):  x, w1t, b1, w_dw, b_dw, w2t, b2, out, hbuf
    refs (has_expand=False): x,           w_dw, b_dw, w2t, b2, out, hbuf
    x    : (B, C_in, H*W)  f32   channel-major (NCHW-native)
    out  : (B, C_out, Ho*Wo) f32 channel-major (lane-dense store)
    hbuf : (H+2, W+2, C_hid) f32 zero-bordered halo scratch (never touches HBM)
    """
    if has_expand:
        (x_ref, w1_ref, b1_ref, wdw_ref, bdw_ref, w2_ref, b2_ref, o_ref, hbuf) = refs
    else:
        (x_ref, wdw_ref, bdw_ref, w2_ref, b2_ref, o_ref, hbuf) = refs
        w1_ref = b1_ref = None

    Ho = (H - 1) // stride + 1
    Wo = (W - 1) // stride + 1

    # Zero the whole halo scratch with ONE unmasked store.  Borders are never written
    # again; the interior is fully overwritten per image.  Done every step because with
    # "parallel" semantics each core owns a private scratch instance.
    hbuf[...] = jnp.zeros((H + 2, W + 2, C_hid), jnp.float32)

    # Hoist all weight loads out of the per-image loop.
    wdw = wdw_ref[...]                       # (3, 3, C_hid) f32, BN2 scale folded
    bdw = bdw_ref[...]                       # (1, 1, C_hid) f32
    w2t = w2_ref[...]                        # (C_out, C_hid) bf16, BN3 scale folded
    b2 = b2_ref[...]                         # (C_out, 1) f32
    if has_expand:
        w1t = w1_ref[...]                    # (C_hid, C_in) bf16, BN1 scale folded
        b1 = b1_ref[...]                     # (C_hid, 1) f32

    for b in range(B):                       # static unroll: B images per grid step
        x_b = x_ref[b]                       # (C_in, H*W) f32

        # --- 1x1 expand conv (+BN bias, ReLU): bf16 MXU operands, f32 accumulate.
        # Channel-major => lane dim of the matmul is H*W (>=128), not C_hid.
        if has_expand:
            h_cm = jnp.dot(w1t, x_b.astype(jnp.bfloat16),
                           preferred_element_type=jnp.float32)   # (C_hid, H*W)
            h_cm = jnp.maximum(h_cm + b1, 0.0)
        else:
            h_cm = x_b                        # C_hid == C_in, exact f32

        # --- stage into the zero-bordered halo scratch, channel-minor so the 9 tap
        # slices below are static major/sublane offsets.  Small in-VMEM transpose only.
        hbuf[1:H + 1, 1:W + 1, :] = h_cm.T.reshape(H, W, C_hid)

        # --- 3x3 depthwise conv (+BN bias, ReLU), f32 on the VPU.  stride=2 computes
        # only the Ho x Wo strided points via strided reads of the padded scratch.
        acc = jnp.zeros((Ho, Wo, C_hid), jnp.float32)
        for ky in range(3):
            for kx in range(3):
                if stride == 1:
                    win = hbuf[ky:ky + Ho, kx:kx + Wo, :]
                else:
                    win = hbuf[pl.ds(ky, Ho, stride), pl.ds(kx, Wo, stride), :]
                acc = acc + win * wdw[ky:ky + 1, kx:kx + 1, :]
        hdw = jnp.maximum(acc + bdw, 0.0)     # (Ho, Wo, C_hid)

        # --- 1x1 project conv (+BN bias) computed TRANSPOSED so the output store is
        # lane-dense (trailing dim Ho*Wo) and already NCHW-native.
        hdw_cm = hdw.reshape(Ho * Wo, C_hid).T.astype(jnp.bfloat16)      # (C_hid, Ho*Wo)
        y = jnp.dot(w2t, hdw_cm, preferred_element_type=jnp.float32)     # (C_out, Ho*Wo)
        y = y + b2
        if use_res:
            y = y + x_b                       # exact f32 residual
        o_ref[b] = y.astype(o_ref.dtype)


# ----------------------------- wrapper -----------------------------

def _fold_bn(bn, eps=1e-5):
    gamma, beta, mean, var = bn
    scale = gamma / jnp.sqrt(var + eps)
    bias = beta - mean * scale
    return scale, bias


def _pick_batch_per_step(n, per_image_io_bytes, io_budget=8 << 20):
    """Largest divisor of n that keeps >=2 grid steps (v7x dual-TC) and fits I/O budget."""
    best = 1
    for b in range(1, n + 1):
        if n % b:
            continue
        if n >= 2 and n // b < 2:
            continue
        if b * per_image_io_bytes > io_budget:
            continue
        best = b
    return best


def mv2block_forward(x_nchw, params, inp, oup, stride=1, expansion=4):
    """MV2Block forward.  x_nchw: (N, inp, H, W) f32 -> (N, oup, Ho, Wo) f32."""
    assert stride in (1, 2)
    hidden = int(inp * expansion)
    use_res = (stride == 1 and inp == oup)
    has_expand = (expansion != 1)

    N, C, H, W = x_nchw.shape
    assert C == inp
    Ho = (H - 1) // stride + 1
    Wo = (W - 1) // stride + 1

    # NCHW-native kernel layout: only a (free) reshape on the host, no transpose/cast pass.
    x_flat = x_nchw.reshape(N, inp, H * W).astype(jnp.float32)

    per_image_io = (inp * H * W + oup * Ho * Wo) * 4
    B = _pick_batch_per_step(N, per_image_io)

    # --- VMEM accounting: scratch + f32 SSA intermediates + double-buffered I/O + weights.
    hbuf_bytes = (H + 2) * (W + 2) * hidden * 4
    interm_bytes = 4 * H * W * hidden * 4 + 3 * Ho * Wo * hidden * 4 + oup * Ho * Wo * 4
    io_bytes = 2 * 2 * B * per_image_io
    weight_bytes = ((inp * hidden + hidden * oup) * 2
                    + (9 + 1) * hidden * 4 + (hidden + oup) * 4)
    vmem_estimate = hbuf_bytes + interm_bytes + io_bytes + weight_bytes
    assert vmem_estimate < 40 * 1024 * 1024, (
        "working set too large for the single-step fused kernel (v7x 64 MiB VMEM); "
        "needs row tiling")
    vmem_limit = int(min(48 << 20, max(8 << 20, 2 * vmem_estimate)))

    # Fold BN scales into the conv weights on the host; biases stay f32.
    s2, bb2 = _fold_bn(params["bn2"])
    w_dw = (params["w_dw"] * s2[None, None, :]).astype(jnp.float32)          # (3,3,hid)
    b_dw = bb2.reshape(1, 1, hidden).astype(jnp.float32)
    s3, bb3 = _fold_bn(params["bn3"])
    w_pw2t = (params["w_pw2"] * s3[None, :]).T.astype(jnp.bfloat16)          # (oup, hid)
    b_pw2 = bb3.reshape(oup, 1).astype(jnp.float32)

    args = [x_flat]
    in_specs = [pl.BlockSpec((B, inp, H * W), lambda n: (n, 0, 0))]
    if has_expand:
        s1, bb1 = _fold_bn(params["bn1"])
        w_pw1t = (params["w_pw1"] * s1[None, :]).T.astype(jnp.bfloat16)      # (hid, inp)
        b_pw1 = bb1.reshape(hidden, 1).astype(jnp.float32)
        args += [w_pw1t, b_pw1]
        in_specs += [pl.BlockSpec((hidden, inp), lambda n: (0, 0)),
                     pl.BlockSpec((hidden, 1), lambda n: (0, 0))]
    args += [w_dw, b_dw, w_pw2t, b_pw2]
    in_specs += [pl.BlockSpec((3, 3, hidden), lambda n: (0, 0, 0)),
                 pl.BlockSpec((1, 1, hidden), lambda n: (0, 0, 0)),
                 pl.BlockSpec((oup, hidden), lambda n: (0, 0)),
                 pl.BlockSpec((oup, 1), lambda n: (0, 0))]

    flops_per_img = ((2 * hidden * inp * H * W if has_expand else 0)
                     + 2 * 9 * Ho * Wo * hidden + 2 * oup * hidden * Ho * Wo)
    cost = pl.CostEstimate(flops=int(N * flops_per_img), transcendentals=0,
                           bytes_accessed=int(N * per_image_io + weight_bytes))

    kernel = functools.partial(
        _mv2_fused_kernel, H=H, W=W, C_in=inp, C_hid=hidden, C_out=oup,
        B=B, stride=stride, use_res=use_res, has_expand=has_expand)

    out = pl.pallas_call(
        kernel,
        out_shape=jax.ShapeDtypeStruct((N, oup, Ho * Wo), jnp.float32),
        grid=(N // B,),
        in_specs=in_specs,
        out_specs=pl.BlockSpec((B, oup, Ho * Wo), lambda n: (n, 0, 0)),
        scratch_shapes=[pltpu.VMEM((H + 2, W + 2, hidden), jnp.float32)],
        compiler_params=pltpu.CompilerParams(
            dimension_semantics=("parallel",), vmem_limit_bytes=vmem_limit),
        cost_estimate=cost,
    )(*args)

    return out.reshape(N, oup, Ho, Wo)       # already NCHW; reshape is free


# ----------------------------- parameters -----------------------------

def _bn_params(key, c):
    k1, k2, k3, k4 = jax.random.split(key, 4)
    gamma = 1.0 + 0.1 * jax.random.normal(k1, (c,), jnp.float32)
    beta = 0.1 * jax.random.normal(k2, (c,), jnp.float32)
    mean = 0.1 * jax.random.normal(k3, (c,), jnp.float32)
    var = 1.0 + 0.1 * jax.random.uniform(k4, (c,), jnp.float32)
    return gamma, beta, mean, var


def init_mv2block_params(key, inp, oup, expansion=4):
    hidden = int(inp * expansion)
    ks = jax.random.split(key, 6)
    params = {}
    if expansion != 1:
        params["w_pw1"] = 0.3 * jax.random.normal(ks[0], (inp, hidden), jnp.float32)
        params["bn1"] = _bn_params(ks[1], hidden)
    params["w_dw"] = 0.3 * jax.random.normal(ks[2], (3, 3, hidden), jnp.float32)
    params["bn2"] = _bn_params(ks[3], hidden)
    params["w_pw2"] = 0.3 * jax.random.normal(ks[4], (hidden, oup), jnp.float32)
    params["bn3"] = _bn_params(ks[5], oup)
    return params


# ----------------------------- pure-JAX reference -----------------------------

def ref_forward(x_nchw, params, inp, oup, stride=1, expansion=4, eps=1e-5):
    hidden = int(inp * expansion)
    x = jnp.transpose(x_nchw, (0, 2, 3, 1)).astype(jnp.float32)

    def bn(h, p):
        gamma, beta, mean, var = p
        return gamma * (h - mean) / jnp.sqrt(var + eps) + beta

    h = x
    if expansion != 1:
        h = jnp.einsum("nhwc,co->nhwo", h, params["w_pw1"])
        h = jax.nn.relu(bn(h, params["bn1"]))
    dn = lax.conv_dimension_numbers(h.shape, (3, 3, 1, hidden), ("NHWC", "HWIO", "NHWC"))
    h = lax.conv_general_dilated(
        h, params["w_dw"].reshape(3, 3, 1, hidden),
        window_strides=(stride, stride), padding=((1, 1), (1, 1)),
        dimension_numbers=dn, feature_group_count=hidden)
    h = jax.nn.relu(bn(h, params["bn2"]))
    h = jnp.einsum("nhwc,co->nhwo", h, params["w_pw2"])
    h = bn(h, params["bn3"])
    if stride == 1 and inp == oup:
        h = h + x
    return jnp.transpose(h, (0, 3, 1, 2))


# ----------------------------- demo -----------------------------

if __name__ == "__main__":
    key = jax.random.PRNGKey(0)
    N, H, W = 2, 16, 16
    configs = [
        # (inp, oup, stride, expansion)
        (8, 8, 1, 4),    # residual path (use_res_connect == True)
        (8, 16, 2, 4),   # stride-2 downsampling path, no residual
        (8, 8, 1, 1),    # expansion == 1 path (no expand conv)
    ]
    for idx, (inp, oup, stride, expansion) in enumerate(configs):
        kx, kp = jax.random.split(jax.random.fold_in(key, idx))
        x = jax.random.normal(kx, (N, inp, H, W), jnp.float32)
        params = init_mv2block_params(kp, inp, oup, expansion)

        out = jax.block_until_ready(
            mv2block_forward(x, params, inp, oup, stride, expansion))
        ref = ref_forward(x, params, inp, oup, stride, expansion)

        assert out.shape == ref.shape, (out.shape, ref.shape)
        # Per-element tolerance (bf16 matmul operands; depthwise/residual/bias are f32).
        err = jnp.abs(out - ref)
        bound = 5e-2 + 5e-2 * jnp.abs(ref)
        if not bool(jnp.all(err <= bound)):
            worst = float(jnp.max(err - bound))
            raise AssertionError(
                f"config {idx}: Pallas output mismatch vs reference "
                f"(max abs err {float(jnp.max(err)):.4e}, worst excess {worst:.4e})")

    print("KERNEL_OK")
</pallas_src>

<mosaic_0001>
module attributes {stable_mosaic.version = 11 : i64} {
  func.func @_mv2_fused_kernel(%arg0: i32, %arg1: memref<1x8x256xf32, #tpu.memory_space<vmem>>, %arg2: memref<32x8xbf16, #tpu.memory_space<vmem>>, %arg3: memref<32x1xf32, #tpu.memory_space<vmem>>, %arg4: memref<3x3x32xf32, #tpu.memory_space<vmem>>, %arg5: memref<1x1x32xf32, #tpu.memory_space<vmem>>, %arg6: memref<8x32xbf16, #tpu.memory_space<vmem>>, %arg7: memref<8x1xf32, #tpu.memory_space<vmem>>, %arg8: memref<1x8x256xf32, #tpu.memory_space<vmem>>, %arg9: memref<18x18x32xf32, #tpu.memory_space<vmem>>) attributes {dimension_semantics = [#tpu.dimension_semantics<parallel>], iteration_bounds = array<i64: 2>, scalar_prefetch = 0 : i64, scratch_operands = 1 : i64, tpu.core_type = #tpu.core_type<tc>, window_params = [{transform_indices = @transform_0, window_bounds = array<i64: 1, 8, 256>}, {pipeline_mode = #tpu.pipeline_mode<synchronous>, transform_indices = @transform_1, window_bounds = array<i64: 32, 8>}, {pipeline_mode = #tpu.pipeline_mode<synchronous>, transform_indices = @transform_2, window_bounds = array<i64: 32, 1>}, {pipeline_mode = #tpu.pipeline_mode<synchronous>, transform_indices = @transform_3, window_bounds = array<i64: 3, 3, 32>}, {pipeline_mode = #tpu.pipeline_mode<synchronous>, transform_indices = @transform_4, window_bounds = array<i64: 1, 1, 32>}, {pipeline_mode = #tpu.pipeline_mode<synchronous>, transform_indices = @transform_5, window_bounds = array<i64: 8, 32>}, {pipeline_mode = #tpu.pipeline_mode<synchronous>, transform_indices = @transform_6, window_bounds = array<i64: 8, 1>}, {transform_indices = @transform_7, window_bounds = array<i64: 1, 8, 256>}]} {
    %cst = arith.constant 0.000000e+00 : f32
    %0 = vector.broadcast %cst : f32 to vector<18x18x32xf32>
    %c0 = arith.constant 0 : index
    %c0_0 = arith.constant 0 : index
    %c0_1 = arith.constant 0 : index
    %1 = vector.load %arg9[%c0, %c0_0, %c0_1] : memref<18x18x32xf32, #tpu.memory_space<vmem>>, vector<18x18x32xf32>
    tpu.vector_store %arg9[%c0, %c0_0, %c0_1], %0 {strides = array<i32>} : memref<18x18x32xf32, #tpu.memory_space<vmem>>, vector<18x18x32xf32>,
    %c0_2 = arith.constant 0 : index
    %c0_3 = arith.constant 0 : index
    %c0_4 = arith.constant 0 : index
    %2 = vector.load %arg4[%c0_2, %c0_3, %c0_4] : memref<3x3x32xf32, #tpu.memory_space<vmem>>, vector<3x3x32xf32>
    %c0_5 = arith.constant 0 : index
    %c0_6 = arith.constant 0 : index
    %c0_7 = arith.constant 0 : index
    %3 = vector.load %arg5[%c0_5, %c0_6, %c0_7] : memref<1x1x32xf32, #tpu.memory_space<vmem>>, vector<1x1x32xf32>
    %c0_8 = arith.constant 0 : index
    %c0_9 = arith.constant 0 : index
    %4 = vector.load %arg6[%c0_8, %c0_9] : memref<8x32xbf16, #tpu.memory_space<vmem>>, vector<8x32xbf16>
    %c0_10 = arith.constant 0 : index
    %c0_11 = arith.constant 0 : index
    %5 = vector.load %arg7[%c0_10, %c0_11] : memref<8x1xf32, #tpu.memory_space<vmem>>, vector<8x1xf32>
    %c0_12 = arith.constant 0 : index
    %c0_13 = arith.constant 0 : index
    %6 = vector.load %arg2[%c0_12, %c0_13] : memref<32x8xbf16, #tpu.memory_space<vmem>>, vector<32x8xbf16>
    %c0_14 = arith.constant 0 : index
    %c0_15 = arith.constant 0 : index
    %7 = vector.load %arg3[%c0_14, %c0_15] : memref<32x1xf32, #tpu.memory_space<vmem>>, vector<32x1xf32>
    %c0_16 = arith.constant 0 : index
    %c0_17 = arith.constant 0 : index
    %c0_18 = arith.constant 0 : index
    %8 = vector.load %arg1[%c0_16, %c0_17, %c0_18] : memref<1x8x256xf32, #tpu.memory_space<vmem>>, vector<1x8x256xf32>
    %9 = vector.shape_cast %8 : vector<1x8x256xf32> to vector<8x256xf32>
    %10 = arith.truncf %9 : vector<8x256xf32> to vector<8x256xbf16>
    %cst_19 = arith.constant dense<0.000000e+00> : vector<32x256xf32>
    %11 = tpu.matmul %6, %10, %cst_19 {dimension_numbers = #tpu.dot_dimension_numbers<[1], [0], [0], [1], [0, 0, 1, 1], [], []>} : vector<32x8xbf16>, vector<8x256xbf16>, vector<32x256xf32> -> vector<32x256xf32>
    %12 = vector.broadcast %7 : vector<32x1xf32> to vector<32x256xf32>
    %13 = arith.addf %11, %12 : vector<32x256xf32>
    %cst_20 = arith.constant 0.000000e+00 : f32
    %14 = vector.broadcast %cst_20 : f32 to vector<32x256xf32>
    %15 = arith.maximumf %13, %14 : vector<32x256xf32>
    %16 = tpu.transpose %15, [1, 0] : vector<32x256xf32> -> vector<256x32xf32>
    %17 = vector.shape_cast %16 : vector<256x32xf32> to vector<16x16x32xf32>
    %c1 = arith.constant 1 : index
    %c1_21 = arith.constant 1 : index
    %c0_22 = arith.constant 0 : index
    %18 = vector.load %arg9[%c1, %c1_21, %c0_22] : memref<18x18x32xf32, #tpu.memory_space<vmem>>, vector<16x16x32xf32>
    tpu.vector_store %arg9[%c1, %c1_21, %c0_22], %17 {strides = array<i32>} : memref<18x18x32xf32, #tpu.memory_space<vmem>>, vector<16x16x32xf32>,
    %cst_23 = arith.constant 0.000000e+00 : f32
    %19 = vector.broadcast %cst_23 : f32 to vector<16x16x32xf32>
    %c0_24 = arith.constant 0 : index
    %c0_25 = arith.constant 0 : index
    %c0_26 = arith.constant 0 : index
    %20 = vector.load %arg9[%c0_24, %c0_25, %c0_26] : memref<18x18x32xf32, #tpu.memory_space<vmem>>, vector<16x16x32xf32>
    %21 = vector.extract_strided_slice %2 {offsets = [0, 0, 0], sizes = [1, 1, 32], strides = [1, 1, 1]} : vector<3x3x32xf32> to vector<1x1x32xf32>
    %22 = vector.broadcast %21 : vector<1x1x32xf32> to vector<16x16x32xf32>
    %23 = arith.mulf %20, %22 : vector<16x16x32xf32>
    %24 = arith.addf %19, %23 : vector<16x16x32xf32>
    %c0_27 = arith.constant 0 : index
    %c1_28 = arith.constant 1 : index
    %c0_29 = arith.constant 0 : index
    %25 = vector.load %arg9[%c0_27, %c1_28, %c0_29] : memref<18x18x32xf32, #tpu.memory_space<vmem>>, vector<16x16x32xf32>
    %26 = vector.extract_strided_slice %2 {offsets = [0, 1, 0], sizes = [1, 1, 32], strides = [1, 1, 1]} : vector<3x3x32xf32> to vector<1x1x32xf32>
    %27 = vector.broadcast %26 : vector<1x1x32xf32> to vector<16x16x32xf32>
    %28 = arith.mulf %25, %27 : vector<16x16x32xf32>
    %29 = arith.addf %24, %28 : vector<16x16x32xf32>
    %c0_30 = arith.constant 0 : index
    %c2 = arith.constant 2 : index
    %c0_31 = arith.constant 0 : index
    %30 = vector.load %arg9[%c0_30, %c2, %c0_31] : memref<18x18x32xf32, #tpu.memory_space<vmem>>, vector<16x16x32xf32>
    %31 = vector.extract_strided_slice %2 {offsets = [0, 2, 0], sizes = [1, 1, 32], strides = [1, 1, 1]} : vector<3x3x32xf32> to vector<1x1x32xf32>
    %32 = vector.broadcast %31 : vector<1x1x32xf32> to vector<16x16x32xf32>
    %33 = arith.mulf %30, %32 : vector<16x16x32xf32>
    %34 = arith.addf %29, %33 : vector<16x16x32xf32>
    %c1_32 = arith.constant 1 : index
    %c0_33 = arith.constant 0 : index
    %c0_34 = arith.constant 0 : index
    %35 = vector.load %arg9[%c1_32, %c0_33, %c0_34] : memref<18x18x32xf32, #tpu.memory_space<vmem>>, vector<16x16x32xf32>
    %36 = vector.extract_strided_slice %2 {offsets = [1, 0, 0], sizes = [1, 1, 32], strides = [1, 1, 1]} : vector<3x3x32xf32> to vector<1x1x32xf32>
    %37 = vector.broadcast %36 : vector<1x1x32xf32> to vector<16x16x32xf32>
    %38 = arith.mulf %35, %37 : vector<16x16x32xf32>
    %39 = arith.addf %34, %38 : vector<16x16x32xf32>
    %c1_35 = arith.constant 1 : index
    %c1_36 = arith.constant 1 : index
    %c0_37 = arith.constant 0 : index
    %40 = vector.load %arg9[%c1_35, %c1_36, %c0_37] : memref<18x18x32xf32, #tpu.memory_space<vmem>>, vector<16x16x32xf32>
    %41 = vector.extract_strided_slice %2 {offsets = [1, 1, 0], sizes = [1, 1, 32], strides = [1, 1, 1]} : vector<3x3x32xf32> to vector<1x1x32xf32>
    %42 = vector.broadcast %41 : vector<1x1x32xf32> to vector<16x16x32xf32>
    %43 = arith.mulf %40, %42 : vector<16x16x32xf32>
    %44 = arith.addf %39, %43 : vector<16x16x32xf32>
    %c1_38 = arith.constant 1 : index
    %c2_39 = arith.constant 2 : index
    %c0_40 = arith.constant 0 : index
    %45 = vector.load %arg9[%c1_38, %c2_39, %c0_40] : memref<18x18x32xf32, #tpu.memory_space<vmem>>, vector<16x16x32xf32>
    %46 = vector.extract_strided_slice %2 {offsets = [1, 2, 0], sizes = [1, 1, 32], strides = [1, 1, 1]} : vector<3x3x32xf32> to vector<1x1x32xf32>
    %47 = vector.broadcast %46 : vector<1x1x32xf32> to vector<16x16x32xf32>
    %48 = arith.mulf %45, %47 : vector<16x16x32xf32>
    %49 = arith.addf %44, %48 : vector<16x16x32xf32>
    %c2_41 = arith.constant 2 : index
    %c0_42 = arith.constant 0 : index
    %c0_43 = arith.constant 0 : index
    %50 = vector.load %arg9[%c2_41, %c0_42, %c0_43] : memref<18x18x32xf32, #tpu.memory_space<vmem>>, vector<16x16x32xf32>
    %51 = vector.extract_strided_slice %2 {offsets = [2, 0, 0], sizes = [1, 1, 32], strides = [1, 1, 1]} : vector<3x3x32xf32> to vector<1x1x32xf32>
    %52 = vector.broadcast %51 : vector<1x1x32xf32> to vector<16x16x32xf32>
    %53 = arith.mulf %50, %52 : vector<16x16x32xf32>
    %54 = arith.addf %49, %53 : vector<16x16x32xf32>
    %c2_44 = arith.constant 2 : index
    %c1_45 = arith.constant 1 : index
    %c0_46 = arith.constant 0 : index
    %55 = vector.load %arg9[%c2_44, %c1_45, %c0_46] : memref<18x18x32xf32, #tpu.memory_space<vmem>>, vector<16x16x32xf32>
    %56 = vector.extract_strided_slice %2 {offsets = [2, 1, 0], sizes = [1, 1, 32], strides = [1, 1, 1]} : vector<3x3x32xf32> to vector<1x1x32xf32>
    %57 = vector.broadcast %56 : vector<1x1x32xf32> to vector<16x16x32xf32>
    %58 = arith.mulf %55, %57 : vector<16x16x32xf32>
    %59 = arith.addf %54, %58 : vector<16x16x32xf32>
    %c2_47 = arith.constant 2 : index
    %c2_48 = arith.constant 2 : index
    %c0_49 = arith.constant 0 : index
    %60 = vector.load %arg9[%c2_47, %c2_48, %c0_49] : memref<18x18x32xf32, #tpu.memory_space<vmem>>, vector<16x16x32xf32>
    %61 = vector.extract_strided_slice %2 {offsets = [2, 2, 0], sizes = [1, 1, 32], strides = [1, 1, 1]} : vector<3x3x32xf32> to vector<1x1x32xf32>
    %62 = vector.broadcast %61 : vector<1x1x32xf32> to vector<16x16x32xf32>
    %63 = arith.mulf %60, %62 : vector<16x16x32xf32>
    %64 = arith.addf %59, %63 : vector<16x16x32xf32>
    %65 = vector.broadcast %3 : vector<1x1x32xf32> to vector<16x16x32xf32>
    %66 = arith.addf %64, %65 : vector<16x16x32xf32>
    %cst_50 = arith.constant 0.000000e+00 : f32
    %67 = vector.broadcast %cst_50 : f32 to vector<16x16x32xf32>
    %68 = arith.maximumf %66, %67 : vector<16x16x32xf32>
    %69 = vector.shape_cast %68 : vector<16x16x32xf32> to vector<256x32xf32>
    %70 = tpu.transpose %69, [1, 0] : vector<256x32xf32> -> vector<32x256xf32>
    %71 = arith.truncf %70 : vector<32x256xf32> to vector<32x256xbf16>
    %cst_51 = arith.constant dense<0.000000e+00> : vector<8x256xf32>
    %72 = tpu.matmul %4, %71, %cst_51 {dimension_numbers = #tpu.dot_dimension_numbers<[1], [0], [0], [1], [0, 0, 1, 1], [], []>} : vector<8x32xbf16>, vector<32x256xbf16>, vector<8x256xf32> -> vector<8x256xf32>
    %73 = vector.broadcast %5 : vector<8x1xf32> to vector<8x256xf32>
    %74 = arith.addf %72, %73 : vector<8x256xf32>
    %75 = arith.addf %74, %9 : vector<8x256xf32>
    %c0_52 = arith.constant 0 : index
    %c0_53 = arith.constant 0 : index
    %c0_54 = arith.constant 0 : index
    %76 = vector.load %arg8[%c0_52, %c0_53, %c0_54] : memref<1x8x256xf32, #tpu.memory_space<vmem>>, vector<1x8x256xf32>
    %77 = vector.shape_cast %76 : vector<1x8x256xf32> to vector<8x256xf32>
    %78 = vector.shape_cast %75 : vector<8x256xf32> to vector<1x8x256xf32>
    tpu.vector_store %arg8[%c0_52, %c0_53, %c0_54], %78 {strides = array<i32>} : memref<1x8x256xf32, #tpu.memory_space<vmem>>, vector<1x8x256xf32>,
    return
  }
  func.func @transform_0(%arg0: i32) -> (i32, i32, i32) {
    %c0_i32 = arith.constant 0 : i32
    %c0_i32_0 = arith.constant 0 : i32
    %c0_i32_1 = arith.constant 0 : i32
    return %arg0, %c0_i32, %c0_i32_0 : i32, i32, i32
  }
  func.func @transform_1(%arg0: i32) -> (i32, i32) {
    %c0_i32 = arith.constant 0 : i32
    %c0_i32_0 = arith.constant 0 : i32
    %c0_i32_1 = arith.constant 0 : i32
    return %c0_i32, %c0_i32_0 : i32, i32
  }
  func.func @transform_2(%arg0: i32) -> (i32, i32) {
    %c0_i32 = arith.constant 0 : i32
    %c0_i32_0 = arith.constant 0 : i32
    %c0_i32_1 = arith.constant 0 : i32
    return %c0_i32, %c0_i32_0 : i32, i32
  }
  func.func @transform_3(%arg0: i32) -> (i32, i32, i32) {
    %c0_i32 = arith.constant 0 : i32
    %c0_i32_0 = arith.constant 0 : i32
    %c0_i32_1 = arith.constant 0 : i32
    %c0_i32_2 = arith.constant 0 : i32
    return %c0_i32, %c0_i32_0, %c0_i32_1 : i32, i32, i32
  }
  func.func @transform_4(%arg0: i32) -> (i32, i32, i32) {
    %c0_i32 = arith.constant 0 : i32
    %c0_i32_0 = arith.constant 0 : i32
    %c0_i32_1 = arith.constant 0 : i32
    %c0_i32_2 = arith.constant 0 : i32
    return %c0_i32, %c0_i32_0, %c0_i32_1 : i32, i32, i32
  }
  func.func @transform_5(%arg0: i32) -> (i32, i32) {
    %c0_i32 = arith.constant 0 : i32
    %c0_i32_0 = arith.constant 0 : i32
    %c0_i32_1 = arith.constant 0 : i32
    return %c0_i32, %c0_i32_0 : i32, i32
  }
  func.func @transform_6(%arg0: i32) -> (i32, i32) {
    %c0_i32 = arith.constant 0 : i32
    %c0_i32_0 = arith.constant 0 : i32
    %c0_i32_1 = arith.constant 0 : i32
    return %c0_i32, %c0_i32_0 : i32, i32
  }
  func.func @transform_7(%arg0: i32) -> (i32, i32, i32) {
    %c0_i32 = arith.constant 0 : i32
    %c0_i32_0 = arith.constant 0 : i32
    %c0_i32_1 = arith.constant 0 : i32
    return %arg0, %c0_i32, %c0_i32_0 : i32, i32, i32
  }
}

</mosaic_0001>

<bundles_post_ra>
// kernel: tpu_custom_call.1
= control target key start
LH: loop header
LB: loop body
LE: loop exit
PB: predicated region body
PF: predicated region fallthrough
CT: control target
= control target key end

     0   :  { %12 = vsyncpa [#allocation4], 0  ;;  %s2999_s0 = inlined_call_operand.vmem [shape: f32[2,8,256], index: 0, kind: input, shape index: {}]   ;;  %s3000_s1 = inlined_call_operand.vmem [shape: bf16[32,8], index: 1, kind: input, shape index: {}]   ;;  %s3001_s2 = inlined_call_operand.vmem [shape: f32[32,1], index: 2, kind: input, shape index: {}]   ;;  %s3002_s3 = inlined_call_operand.vmem [shape: f32[3,3,32], index: 3, kind: input, shape index: {}]   ;;  %s3003_s4 = inlined_call_operand.vmem [shape: f32[1,1,32], index: 4, kind: input, shape index: {}]   ;;  %s3004_s5 = inlined_call_operand.vmem [shape: bf16[8,32], index: 5, kind: input, shape index: {}]   ;;  %s3005_s6 = inlined_call_operand.vmem [shape: f32[8,1], index: 6, kind: input, shape index: {}]   ;;  %s3006_s7 = inlined_call_operand.hbm [shape: f32[2,8,256], index: 7, kind: output, shape index: {}]  }
   0x1   :  { %14 = vsyncpa [#allocation4 + $0x1], 0  ;;  %s1946_s24 = smov 0   ;;  %s1948_s25 = smov 0  }
   0x2   :  { %s1950_s26 = smov 0   ;;  %s1952_s27 = smov 0  }
   0x3 LB: > { %s1967_s28 = sadd.s32 4294967295, %s1901_s27   ;;  %s1720_s29 = sadd.s32 4294967294, %s1901_s27   ;;  %s1901_s27 = sphi %s1952_s27, %s3054_s27   ;;  %s1897_s26 = sphi %s1950_s26, %s3053_s26   ;;  %s1893_s25 = sphi %s1948_s25, %s3052_s25   ;;  %s1889_s24 = sphi %s1946_s24, %s3051_s24  }
   0x4   : > { %s1971_s30 = sadd.s32 1, %s1901_s27   ;;  %s179_s8 = sadd.s32 1, %s1897_s26 }
   0x5   : > { %s176_s9 = ssub.s32 %s1901_s27, %s1971_s30  ;;  %p189_p0 = scmp.ne.s32.totalorder %s1897_s26, %s1893_s25 }
   0x6   : > { %p177_p1 = scmp.eq.s32.totalorder %s176_s9, 0  ;;  %p190_p2 = scmp.eq.s32.totalorder %s1967_s28, 1 }
   0x7   : > { %p195_p3 = scmp.ne.s32.totalorder %s1893_s25, %s1889_s24  ;;  %p196_p4 = scmp.eq.s32.totalorder %s1720_s29, 1 }
   0x8   : > { %s1982_s10 = scalar_select %p177_p1, %s1897_s26, %s179_s8  }
   0x9   : > { %p1984_p5 = por %p190_p2, %p189_p0  ;;  %p1988_p6 = por %p196_p4, %p195_p3 }
   0xa   : > { %p1723_p7 = scmp.ge.s32.totalorder %s1901_s27, 1  ;;  %p240_p8 = scmp.lt.s32.totalorder %s1901_s27, 3 }
   0xc   : > { %p241_p9 = pnand %p1723_p7, %p240_p8 }
   0xe   : > { %244 = sbr.rel (%p241_p9) target bundleno = 831 (0x33f), region = 48 }
  0x13   : > { %p272_p10 = scmp.lt.s32.totalorder %s1967_s28, 1  ;;  %v1903_v0 = vmov 0   ;;  %v344_v1 = vld [vmem:[%s3001_s2] sm:$0xff]  ;;  %v346_v2 = vld [vmem:[%s3001_s2 + $0x10] sm:$0xff]  ;;  %v345_v3 = vld [vmem:[%s3001_s2 + $0x8] sm:$0xff]  ;;  %vm389_vm0 = vcmask 1043456   ;;  %v586_v42 = vlaneseq }
  0x14   : > { %428 = vmatprep.mubr.bf16.mxu0 %v1903_v0  ;;  %1782 = vset.pattern.permute.xlu0 %v1903_v0  ;;  %v347_v4 = vld [vmem:[%s3001_s2 + $0x18] sm:$0xff]  ;;  %v1836_v10 = vld [vmem:[%s3000_s1] sm:$0xff]   ;;  %vm382_vm1 = vcmask 64512   ;;  %v1837_v11 = vld [vmem:[%s3000_s1 + $0x8] sm:$0xff]   ;;  %vm278_vm2 = vcmask 261120   ;;  %v1904_v12 = vmov 0.0  }
  0x15   : > { %s273_s13 = scalar_select %p272_p10, %s1967_s28, 1  ;;  %1783 = vset.pattern.permute.xlu1 %v1903_v0  ;;  %1633 = vmatprep.mubr.bf16.mxu1 %v1903_v0  ;;  %283 = vst.msk [vmem:[#allocation2 + $0x18] sm:$0xff] %vm278_vm2, %v1904_v12  ;;  %284 = vst.msk [vmem:[#allocation2 + $0x20] sm:$0xff] %vm278_vm2, %v1904_v12  ;;  %vm281_vm3 = vcmask 254976   ;;  %v339_v41 = vld [vmem:[%s3005_s6] sm:$0xff]  ;;  %v587_v43 = vshrl.u32 %v586_v42, 7 }
  0x16   : > { %354 = vperm.xlu0 %1782, %v344_v1   ;;  %364 = vperm.xlu1 %1783, %v346_v2   ;;  %279 = vst.msk [vmem:[#allocation2] sm:$0xff] %vm278_vm2, %v1904_v12  ;;  %280 = vst.msk [vmem:[#allocation2 + $0x8] sm:$0xff] %vm278_vm2, %v1904_v12  ;;  %v334_v46 = vld [vmem:[%s3002_s3] sm:$0x7]  ;;  %v335_v60 = vld [vmem:[%s3002_s3 + $0x4] sm:$0x7] }
  0x17   : > { %s1739_s18 = sshll.u32 %s273_s13, 4  ;;  %286 = vst.msk [vmem:[#allocation2 + $0x30] sm:$0xff] %vm278_vm2, %v1904_v12  ;;  %287 = vst.msk [vmem:[#allocation2 + $0x38] sm:$0xff] %vm278_vm2, %v1904_v12  ;;  %v588_v44 = vsub.s32 0, %v587_v43  ;;  %v688_v45 = vsub.s32 1, %v587_v43  ;;  %v788_v49 = vsub.s32 2, %v587_v43 }
  0x18   : > { %s2008_s23 = scalar_lea.vmem %s2999_s0, %s1739_s18  ;;  %289 = vst.msk [vmem:[#allocation2 + $0x48] sm:$0xff] %vm278_vm2, %v1904_v12  ;;  %290 = vst.msk [vmem:[#allocation2 + $0x50] sm:$0xff] %vm278_vm2, %v1904_v12  ;;  %s269_s17 = sand.u32 1, %s1893_s25  }
  0x19   : > { %v349_v5 = vld [vmem:[%s2008_s23 + $0x8] sm:$0xff]  ;;  %v348_v6 = vld [vmem:[%s2008_s23] sm:$0xff]  ;;  %292 = vst.msk [vmem:[#allocation2 + $0x60] sm:$0xff] %vm278_vm2, %v1904_v12  ;;  %293 = vst.msk [vmem:[#allocation2 + $0x68] sm:$0xff] %vm278_vm2, %v1904_v12  ;;  %v2081_v47 = vrot.slane %v334_v46, %v588_v44  ;;  %v2083_v48 = vrot.slane %v334_v46, %v688_v45  ;;  %v2087_v54 = vrot.slane %v334_v46, %v788_v49  ;;  %s1724_s18 = sshll.u32 %s269_s17, 4  ;;  %s1740_s19 = sshll.u32 %s1967_s28, 8 }
  0x1a   : > { %v351_v7 = vpack.c.bf16 %v349_v5, %v349_v5  ;;  %v350_v8 = vpack.c.bf16 %v348_v6, %v348_v6  ;;  %359 = vperm.xlu0 %1782, %v345_v3   ;;  %369 = vperm.xlu1 %1783, %v347_v4   ;;  %295 = vst.msk [vmem:[#allocation2 + $0x78] sm:$0xff] %vm278_vm2, %v1904_v12  ;;  %296 = vst.msk [vmem:[#allocation2 + $0x80] sm:$0xff] %vm278_vm2, %v1904_v12  ;;  %s271_s20 = scalar_lea.vmem [#allocation3], %s1724_s18  ;;  %s2964_s8 = scalar_lea.hbm %s3006_s7, %s1740_s19 }
  0x1b   : > { %298 = vst.msk [vmem:[#allocation2 + $0x90] sm:$0xff] %vm278_vm2, %v1904_v12  ;;  %299 = vst.msk [vmem:[#allocation2 + $0x98] sm:$0xff] %vm278_vm2, %v1904_v12  ;;  %v2098_v3 = vrot.slane %v335_v60, %v588_v44  ;;  %s1661_s21 = sshll.u32 %s271_s20, 4  ;;  %s1647_s9 = scalar_lea.sflag [#allocation4], %s269_s17  ;;  %s1662_s21 = int_to_ptr.vmem [resolvable:$true] %s1661_s21 }
  0x1c   : > { %1729 = vmatprep.subr.msk.bf16.mxu0 %vm389_vm0, %v351_v7  ;;  %v391_v9 = vsel %vm389_vm0, %v350_v8, 0  ;;  %301 = vst.msk [vmem:[#allocation2 + $0xa8] sm:$0xff] %vm278_vm2, %v1904_v12  ;;  %302 = vst.msk [vmem:[#allocation2 + $0xb0] sm:$0xff] %vm278_vm2, %v1904_v12  ;;  %v336_v7 = vld [vmem:[%s3002_s3 + $0x8] sm:$0x7]  ;;  %s1841_s28 = scalar_lea.vmem %s1662_s21, 256 }
  0x1d   : > { %411 = vmatpush1.bf16.msra.mxu0 %v391_v9  ;;  %304 = vst.msk [vmem:[#allocation2 + $0xc0] sm:$0xff] %vm278_vm2, %v1904_v12  ;;  %305 = vst.msk [vmem:[#allocation2 + $0xc8] sm:$0xff] %vm278_vm2, %v1904_v12  ;;  %v554_v50 = vld [vmem:[#allocation2] sm:$0xff]  ;;  %v555_v55 = vld [vmem:[#allocation2 + $0x8] sm:$0xff]  ;;  %v2105_v9 = vrot.slane %v335_v60, %v688_v45  ;;  %p1842_p11 = scmp.ne.s32.totalorder %s1662_s21, %s1841_s28  ;;  %s1905_s13 = smov [#allocation3]  }
  0x1e   : > { %307 = vst.msk [vmem:[#allocation2 + $0xd8] sm:$0xff] %vm278_vm2, %v1904_v12  ;;  %308 = vst.msk [vmem:[#allocation2 + $0xe0] sm:$0xff] %vm278_vm2, %v1904_v12  ;;  %v654_v51 = vld [vmem:[#allocation2 + $0x1] sm:$0xff]  ;;  %v590_v52 = vmul.f32 %v2081_v47, %v554_v50  ;;  %v591_v61 = vmul.f32 %v2081_v47, %v555_v55  ;;  %s1845_s14 = sshll.u32 %s1905_s13, 4  ;;  %s1846_s14 = int_to_ptr.vmem [resolvable:$false] %s1845_s14 }
  0x1f   : > { %310 = vst.msk [vmem:[#allocation2 + $0xf0] sm:$0xff] %vm278_vm2, %v1904_v12  ;;  %311 = vst.msk [vmem:[#allocation2 + $0xf8] sm:$0xff] %vm278_vm2, %v1904_v12  ;;  %v690_v53 = vmul.f32 %v2083_v48, %v654_v51  ;;  %v754_v58 = vld [vmem:[#allocation2 + $0x2] sm:$0xff]  ;;  %p1843_p12 = pnand %p1842_p11, %p1984_p5  ;;  %s1847_s15 = scalar_lea.vmem %s1846_s14, 512 }
  0x20   : > { %1730 = vmatmul.mubr.msk.bf16.vlgmr.msra.gmra.mxu0 %vm382_vm1, %v1836_v10  ;;  %313 = vst.msk [vmem:[#allocation2 + $0x108] sm:$0xff] %vm278_vm2, %v1904_v12  ;;  %314 = vst.msk [vmem:[#allocation2 + $0x110] sm:$0xff] %vm278_vm2, %v1904_v12  ;;  %p1848_p0 = scmp.lt.s32.totalorder %s1662_s21, %s1846_s14  ;;  %p1849_p1 = scmp.lt.s32.totalorder %s1847_s15, %s1841_s28 }
  0x21   : > { %438 = vmatprep.mubr.bf16.mxu0 %v1903_v0  ;;  %316 = vst.msk [vmem:[#allocation2 + $0x120] sm:$0xff] %vm278_vm2, %v1904_v12  ;;  %317 = vst.msk [vmem:[#allocation2 + $0x128] sm:$0xff] %vm278_vm2, %v1904_v12  ;;  %v722_v63 = vadd.f32 %v690_v53, %v590_v52  ;;  %v790_v0 = vmul.f32 %v2087_v54, %v754_v58  ;;  %p1844_p13 = pneg %p1843_p12 }
  0x22   : > { %319 = vst.msk [vmem:[#allocation2 + $0x138] sm:$0xff] %vm278_vm2, %v1904_v12  ;;  %320 = vst.msk [vmem:[#allocation2 + $0x140] sm:$0xff] %vm278_vm2, %v1904_v12  ;;  %p1850_p2 = por %p1849_p1, %p1848_p0 }
  0x23   : > { %322 = vst.msk [vmem:[#allocation2 + $0x150] sm:$0xff] %vm278_vm2, %v1904_v12  ;;  %323 = vst.msk [vmem:[#allocation2 + $0x158] sm:$0xff] %vm278_vm2, %v1904_v12  ;;  %v822_v8 = vadd.f32 %v790_v0, %v722_v63 }
  0x24   : > { %325 = vst.msk [vmem:[#allocation2 + $0x168] sm:$0xff] %vm278_vm2, %v1904_v12  ;;  %326 = vst.msk [vmem:[#allocation2 + $0x170] sm:$0xff] %vm278_vm2, %v1904_v12  ;;  %p1851_p3 = pnand %p1850_p2, %p1844_p13 }
  0x25   : > { %328 = vst.msk [vmem:[#allocation2 + $0x180] sm:$0xff] %vm278_vm2, %v1904_v12  ;;  %329 = vst.msk [vmem:[#allocation2 + $0x188] sm:$0xff] %vm278_vm2, %v1904_v12 }
  0x26   : > { %331 = vst.msk [vmem:[#allocation2 + $0x198] sm:$0xff] %vm278_vm2, %v1904_v12  ;;  %332 = vst.msk [vmem:[#allocation2 + $0x1a0] sm:$0xff] %vm278_vm2, %v1904_v12 }
  0x27   : > { %285 = vst.msk [vmem:[#allocation2 + $0x28] sm:$0x3] %vm281_vm3, %v1904_v12  ;;  %282 = vst.msk [vmem:[#allocation2 + $0x10] sm:$0x3] %vm281_vm3, %v1904_v12 }
  0x28   : > { %1731 = vmatmul.mubr.msk.bf16.gmra.mxu0 %vm382_vm1, %v1837_v11  ;;  %288 = vst.msk [vmem:[#allocation2 + $0x40] sm:$0x3] %vm281_vm3, %v1904_v12  ;;  %291 = vst.msk [vmem:[#allocation2 + $0x58] sm:$0x3] %vm281_vm3, %v1904_v12 }
  0x29   : > { %294 = vst.msk [vmem:[#allocation2 + $0x70] sm:$0x3] %vm281_vm3, %v1904_v12  ;;  %297 = vst.msk [vmem:[#allocation2 + $0x88] sm:$0x3] %vm281_vm3, %v1904_v12 }
  0x2a   : > { %300 = vst.msk [vmem:[#allocation2 + $0xa0] sm:$0x3] %vm281_vm3, %v1904_v12  ;;  %303 = vst.msk [vmem:[#allocation2 + $0xb8] sm:$0x3] %vm281_vm3, %v1904_v12 }
  0x2b   : > { %306 = vst.msk [vmem:[#allocation2 + $0xd0] sm:$0x3] %vm281_vm3, %v1904_v12  ;;  %309 = vst.msk [vmem:[#allocation2 + $0xe8] sm:$0x3] %vm281_vm3, %v1904_v12 }
  0x2c   : > { %312 = vst.msk [vmem:[#allocation2 + $0x100] sm:$0x3] %vm281_vm3, %v1904_v12  ;;  %315 = vst.msk [vmem:[#allocation2 + $0x118] sm:$0x3] %vm281_vm3, %v1904_v12 }
  0x2d   : > { %318 = vst.msk [vmem:[#allocation2 + $0x130] sm:$0x3] %vm281_vm3, %v1904_v12  ;;  %321 = vst.msk [vmem:[#allocation2 + $0x148] sm:$0x3] %vm281_vm3, %v1904_v12 }
  0x2e   : > { %324 = vst.msk [vmem:[#allocation2 + $0x160] sm:$0x3] %vm281_vm3, %v1904_v12  ;;  %327 = vst.msk [vmem:[#allocation2 + $0x178] sm:$0x3] %vm281_vm3, %v1904_v12  ;;  %v655_v56 = vld [vmem:[#allocation2 + $0x9] sm:$0xff] }
  0x2f   : > { %330 = vst.msk [vmem:[#allocation2 + $0x190] sm:$0x3] %vm281_vm3, %v1904_v12  ;;  %333 = vst.msk [vmem:[#allocation2 + $0x1a8] sm:$0x3] %vm281_vm3, %v1904_v12  ;;  %v691_v62 = vmul.f32 %v2083_v48, %v655_v56  ;;  %v755_v1 = vld [vmem:[#allocation2 + $0xa] sm:$0xff] }
  0x30   : > { %v791_v6 = vmul.f32 %v2087_v54, %v755_v1 }
  0x31   : > { %v723_v5 = vadd.f32 %v691_v62, %v591_v61 }
  0x91   : > { %v355_v13 = vpop.permute.xlu0 %354  ;;  %v365_v23 = vpop.permute.xlu1 %364 }
  0x95   : > { %v360_v19 = vpop.permute.xlu0 %359  ;;  %v370_v33 = vpop.permute.xlu1 %369 }
  0xe0   : > { %v430_v14 = vpop.f32.mrf.mxu0 }
  0xe1   : > { %v431_v15 = vadd.f32 %v430_v14, %v355_v13  ;;  %v2109_v14 = vrot.slane %v335_v60, %v788_v49 }
  0xe2   : > { %v432_v16 = vpop.f32.mrf.mxu0 }
  0xe3   : > { %v449_v17 = vmax.f32 %v431_v15, 0.0  ;;  %v433_v18 = vadd.f32 %v432_v16, %v355_v13 }
  0xe4   : > { %v434_v20 = vpop.f32.mrf.mxu0 }
  0xe5   : > { %v450_v21 = vmax.f32 %v433_v18, 0.0  ;;  %v435_v22 = vadd.f32 %v434_v20, %v360_v19  ;;  %457 = vxpose.xlu0.b32.start [1/4] (short) %v449_v17, 128  ;;  %v2113_v20 = vrot.slane %v336_v7, %v588_v44 }
  0xe6   : > { %v436_v24 = vpop.f32.mrf.mxu0 }
  0xe7   : > { %v451_v25 = vmax.f32 %v435_v22, 0.0  ;;  %v437_v26 = vadd.f32 %v436_v24, %v360_v19  ;;  %489 = vxpose.xlu1.b32.start [1/4] (short) %v450_v21, 128  ;;  %v2115_v21 = vrot.slane %v336_v7, %v688_v45  ;;  %v823_v22 = vadd.f32 %v791_v6, %v723_v5 }
  0xe8   : > { %v440_v27 = vpop.f32.mrf.mxu0 }
  0xe9   : > { %v452_v28 = vmax.f32 %v437_v26, 0.0  ;;  %v441_v29 = vadd.f32 %v440_v27, %v365_v23  ;;  %458 = vxpose.xlu0.b32.cont [2/4] (short) %v451_v25, 128  ;;  %v2119_v25 = vrot.slane %v336_v7, %v788_v49 }
  0xea   : > { %v442_v30 = vpop.f32.mrf.mxu0 }
  0xeb   : > { %v453_v31 = vmax.f32 %v441_v29, 0.0  ;;  %v443_v32 = vadd.f32 %v442_v30, %v365_v23  ;;  %490 = vxpose.xlu1.b32.cont [2/4] (short) %v452_v28, 128 }
  0xec   : > { %v444_v34 = vpop.f32.mrf.mxu0 }
  0xed   : > { %v454_v35 = vmax.f32 %v443_v32, 0.0  ;;  %v445_v36 = vadd.f32 %v444_v34, %v370_v33  ;;  %459 = vxpose.xlu0.b32.cont [3/4] (short) %v453_v31, 128 }
  0xee   : > { %v446_v37 = vpop.f32.mrf.mxu0 }
  0xef   : > { %v455_v38 = vmax.f32 %v445_v36, 0.0  ;;  %v447_v39 = vadd.f32 %v446_v37, %v370_v33  ;;  %491 = vxpose.xlu1.b32.cont [3/4] (short) %v454_v35, 128 }
  0xf1   : > { %v456_v40 = vmax.f32 %v447_v39, 0.0  ;;  %460 = vxpose.xlu0.b32.end [4/4] (short) %v455_v38, 128 }
  0xf3   : > { %492 = vxpose.xlu1.b32.end [4/4] (short) %v456_v40, 128 }
 0x141   : > { %1595 = vperm.xlu1 %1783, %v339_v41  }
 0x161   : > { %v473_v57 = vpop.trf.xlu0 }
 0x162   : > { %522 = vst.msk [vmem:[#allocation2 + $0x19] sm:$0xff] %vm278_vm2, %v473_v57 }
 0x163   : > { %v505_v59 = vpop.trf.xlu1 }
 0x164   : > { %538 = vst.msk [vmem:[#allocation2 + $0xd9] sm:$0xff] %vm278_vm2, %v505_v59 }
 0x165   : > { %v474_v2 = vpop.trf.xlu0 }
 0x166   : > { %523 = vst.msk [vmem:[#allocation2 + $0x21] sm:$0xff] %vm278_vm2, %v474_v2 }
 0x167   : > { %v506_v4 = vpop.trf.xlu1 }
 0x168   : > { %539 = vst.msk [vmem:[#allocation2 + $0xe1] sm:$0xff] %vm278_vm2, %v506_v4 }
 0x169   : > { %v475_v10 = vpop.trf.xlu0  ;;  %v854_v11 = vld [vmem:[#allocation2 + $0x18] sm:$0xff] }
 0x16a   : > { %v954_v12 = vld [vmem:[#allocation2 + $0x19] sm:$0xff]  ;;  %524 = vst.msk [vmem:[#allocation2 + $0x31] sm:$0xff] %vm278_vm2, %v475_v10  ;;  %v890_v13 = vmul.f32 %v2098_v3, %v854_v11  ;;  %v592_v15 = vmul.f32 %v854_v11, %v2081_v47 }
 0x16b   : > { %v692_v16 = vmul.f32 %v954_v12, %v2083_v48  ;;  %v507_v17 = vpop.trf.xlu1  ;;  %v870_v18 = vld [vmem:[#allocation2 + $0xd8] sm:$0xff]  ;;  %v990_v24 = vmul.f32 %v2105_v9, %v954_v12 }
 0x16c   : > { %v970_v19 = vld [vmem:[#allocation2 + $0xd9] sm:$0xff]  ;;  %540 = vst.msk [vmem:[#allocation2 + $0xf1] sm:$0xff] %vm278_vm2, %v507_v17  ;;  %v922_v23 = vadd.f32 %v890_v13, %v822_v8  ;;  %v608_v26 = vmul.f32 %v870_v18, %v2081_v47  ;;  %v2123_v28 = vmul.f32 %v2098_v3, %v870_v18 }
 0x16d   : > { %v476_v27 = vpop.trf.xlu0  ;;  %v2126_v29 = vmul.f32 %v2105_v9, %v970_v19  ;;  %v1054_v30 = vld [vmem:[#allocation2 + $0x1a] sm:$0xff]  ;;  %v708_v33 = vmul.f32 %v970_v19, %v2083_v48  ;;  %v724_v34 = vadd.f32 %v692_v16, %v592_v15  ;;  %v2133_v39 = vld [vmem:[#allocation2 + $0x22] sm:$0xff] }
 0x16e   : > { %v855_v31 = vld [vmem:[#allocation2 + $0x20] sm:$0xff]  ;;  %525 = vst.msk [vmem:[#allocation2 + $0x39] sm:$0xff] %vm278_vm2, %v476_v27  ;;  %v1022_v35 = vadd.f32 %v990_v24, %v922_v23  ;;  %v1090_v36 = vmul.f32 %v2109_v14, %v1054_v30  ;;  %v1091_v43 = vmul.f32 %v2109_v14, %v2133_v39  ;;  %v792_v45 = vmul.f32 %v1054_v30, %v2087_v54 }
 0x16f   : > { %v955_v32 = vld [vmem:[#allocation2 + $0x21] sm:$0xff]  ;;  %v891_v37 = vmul.f32 %v2098_v3, %v855_v31  ;;  %v508_v40 = vpop.trf.xlu1  ;;  %v740_v44 = vadd.f32 %v708_v33, %v608_v26  ;;  %v2139_v46 = vmul.f32 %v855_v31, %v2081_v47 }
 0x170   : > { %v991_v38 = vmul.f32 %v2105_v9, %v955_v32  ;;  %v1070_v41 = vld [vmem:[#allocation2 + $0xda] sm:$0xff]  ;;  %541 = vst.msk [vmem:[#allocation2 + $0xf9] sm:$0xff] %vm278_vm2, %v508_v40  ;;  %v1122_v50 = vadd.f32 %v1090_v36, %v1022_v35  ;;  %v2148_v55 = vld [vmem:[#allocation2 + $0xe2] sm:$0xff]  ;;  %v824_v62 = vadd.f32 %v792_v45, %v724_v34  ;;  %v693_v11 = vmul.f32 %v955_v32, %v2083_v48 }
 0x171   : > { %v871_v42 = vld [vmem:[#allocation2 + $0xe0] sm:$0xff]  ;;  %v2143_v49 = vmul.f32 %v2109_v14, %v1070_v41  ;;  %v923_v52 = vadd.f32 %v891_v37, %v823_v22  ;;  %v477_v56 = vpop.trf.xlu0  ;;  %v2150_v57 = vld [vmem:[#allocation2 + $0x30] sm:$0xff]  ;;  %v2159_v60 = vmul.f32 %v2109_v14, %v2148_v55  ;;  %v808_v61 = vmul.f32 %v1070_v41, %v2087_v54 }
 0x172   : > { %v2146_v51 = vmul.f32 %v2098_v3, %v871_v42  ;;  %v971_v53 = vld [vmem:[#allocation2 + $0xe1] sm:$0xff]  ;;  %v2152_v58 = vld [vmem:[#allocation2 + $0x31] sm:$0xff]  ;;  %526 = vst.msk [vmem:[#allocation2 + $0x49] sm:$0xff] %vm278_vm2, %v477_v56  ;;  %v1191_v63 = vmul.f32 %v2113_v20, %v2150_v57  ;;  %v892_v2 = vmul.f32 %v2150_v57, %v2098_v3  ;;  %v609_v10 = vmul.f32 %v871_v42, %v2081_v47  ;;  %v2209_v36 = vld [vmem:[%s3003_s4] ss:$0 sm:$0xff] }
 0x173   : > { %v2155_v59 = vmul.f32 %v2105_v9, %v971_v53  ;;  %3019 = vst [vmem:[#allocation6_spill] sm:$0xff] %v2159_v60  ;;  %v1291_v0 = vmul.f32 %v2115_v21, %v2152_v58  ;;  %v1023_v1 = vadd.f32 %v991_v38, %v923_v52  ;;  %v509_v4 = vpop.trf.xlu1  ;;  %v2169_v5 = vld [vmem:[#allocation2 + $0xf0] sm:$0xff]  ;;  %v840_v7 = vadd.f32 %v808_v61, %v740_v44 }
 0x174   : > { %v2171_v6 = vld [vmem:[#allocation2 + $0xf1] sm:$0xff]  ;;  %v992_v8 = vmul.f32 %v2152_v58, %v2105_v9  ;;  %542 = vst.msk [vmem:[#allocation2 + $0x109] sm:$0xff] %vm278_vm2, %v509_v4  ;;  %v2180_v12 = vmul.f32 %v2113_v20, %v2169_v5  ;;  %v1223_v13 = vadd.f32 %v1191_v63, %v1122_v50  ;;  %v908_v23 = vmul.f32 %v2169_v5, %v2098_v3 }
 0x175   : > { %v2184_v15 = vmul.f32 %v2115_v21, %v2171_v6  ;;  %v1123_v16 = vadd.f32 %v1091_v43, %v1023_v1  ;;  %v478_v17 = vpop.trf.xlu0  ;;  %v2186_v18 = vld [vmem:[#allocation2 + $0x32] sm:$0xff]  ;;  %v924_v24 = vadd.f32 %v892_v2, %v824_v62  ;;  %v1008_v26 = vmul.f32 %v2171_v6, %v2105_v9  ;;  %v2204_v34 = vld [vmem:[#allocation2 + $0x3a] sm:$0xff] }
 0x176   : > { %v2188_v19 = vld [vmem:[#allocation2 + $0x38] sm:$0xff]  ;;  %v709_v27 = vmul.f32 %v971_v53, %v2083_v48  ;;  %527 = vst.msk [vmem:[#allocation2 + $0x51] sm:$0xff] %vm278_vm2, %v478_v17  ;;  %v1323_v30 = vadd.f32 %v1291_v0, %v1223_v13  ;;  %v1391_v31 = vmul.f32 %v2119_v25, %v2186_v18  ;;  %v1392_v40 = vmul.f32 %v2119_v25, %v2204_v34 }
 0x177   : > { %3020 = vst [vmem:[#allocation7_spill] sm:$0xff] %v2184_v15  ;;  %v2190_v22 = vld [vmem:[#allocation2 + $0x39] sm:$0xff]  ;;  %v1192_v32 = vmul.f32 %v2113_v20, %v2188_v19  ;;  %v510_v35 = vpop.trf.xlu1  ;;  %v940_v41 = vadd.f32 %v908_v23, %v840_v7  ;;  %v1024_v42 = vadd.f32 %v992_v8, %v924_v24  ;;  %v1092_v43 = vmul.f32 %v2186_v18, %v2109_v14 }
 0x178   : > { %v1292_v33 = vmul.f32 %v2115_v21, %v2190_v22  ;;  %v2211_v37 = vld [vmem:[#allocation2 + $0xf2] sm:$0xff]  ;;  %543 = vst.msk [vmem:[#allocation2 + $0x111] sm:$0xff] %vm278_vm2, %v510_v35  ;;  %v1423_v45 = vadd.f32 %v1391_v31, %v1323_v30  ;;  %v2230_v56 = vld [vmem:[#allocation2 + $0xfa] sm:$0xff]  ;;  %v725_v31 = vadd.f32 %v693_v11, %v2139_v46  ;;  %v809_v46 = vmul.f32 %v2148_v55, %v2087_v54 }
 0x179   : > { %v2213_v38 = vld [vmem:[#allocation2 + $0xf8] sm:$0xff]  ;;  %v2222_v44 = vmul.f32 %v2119_v25, %v2211_v37  ;;  %v1224_v52 = vadd.f32 %v1192_v32, %v1123_v16  ;;  %v479_v61 = vpop.trf.xlu0  ;;  %v2238_v63 = vmul.f32 %v2119_v25, %v2230_v56  ;;  %v1040_v0 = vadd.f32 %v1008_v26, %v940_v41  ;;  %v2242_v2 = vld [vmem:[#allocation2 + $0x48] sm:$0xff] }
 0x17a   : > { %v2226_v50 = vmul.f32 %v2113_v20, %v2213_v38  ;;  %v2228_v53 = vld [vmem:[#allocation2 + $0xf9] sm:$0xff]  ;;  %v1108_v1 = vmul.f32 %v2211_v37, %v2109_v14  ;;  %v2244_v4 = vld [vmem:[#allocation2 + $0x49] sm:$0xff]  ;;  %528 = vst.msk [vmem:[#allocation2 + $0x61] sm:$0xff] %vm278_vm2, %v479_v61  ;;  %v2248_v7 = vadd.f32 %v2209_v36, %v1423_v45  ;;  %v1124_v13 = vadd.f32 %v1092_v43, %v1024_v42 }
 0x17b   : > { %3021 = vst [vmem:[#allocation8_spill] sm:$0xff] %v2222_v44  ;;  %v2234_v62 = vmul.f32 %v2115_v21, %v2228_v53  ;;  %3024 = vst [vmem:[#allocation11_spill] sm:$0xff] %v2238_v63  ;;  %v1324_v8 = vadd.f32 %v1292_v33, %v1224_v52  ;;  %v1193_v16 = vmul.f32 %v2113_v20, %v2242_v2  ;;  %v511_v17 = vpop.trf.xlu1  ;;  %v2252_v24 = vld [vmem:[#allocation2 + $0x108] sm:$0xff] }
 0x17c   : > { %3022 = vst [vmem:[#allocation9_spill] sm:$0xff] %v2226_v50  ;;  %3025 = vst [vmem:[#allocation12_spill] sm:$0xff] %v2248_v7  ;;  %v1140_v23 = vadd.f32 %v1108_v1, %v1040_v0  ;;  %v2254_v26 = vld [vmem:[#allocation2 + $0x109] sm:$0xff]  ;;  %v1293_v30 = vmul.f32 %v2115_v21, %v2244_v4  ;;  %v741_v32 = vadd.f32 %v709_v27, %v609_v10 }
 0x17d   : > { %3023 = vst [vmem:[#allocation10_spill] sm:$0xff] %v2234_v62  ;;  %544 = vst.msk [vmem:[#allocation2 + $0x121] sm:$0xff] %vm278_vm2, %v511_v17  ;;  %v1424_v35 = vadd.f32 %v1392_v40, %v1324_v8  ;;  %v1209_v41 = vmul.f32 %v2113_v20, %v2252_v24  ;;  %v1225_v42 = vadd.f32 %v1193_v16, %v1124_v13  ;;  %v480_v43 = vpop.trf.xlu0  ;;  %v2265_v52 = vld [vmem:[#allocation2 + $0x4a] sm:$0xff] }
 0x17e   : > { %v1309_v45 = vmul.f32 %v2115_v21, %v2254_v26  ;;  %v793_v61 = vmul.f32 %v2133_v39, %v2087_v54  ;;  %v893_v10 = vmul.f32 %v2188_v19, %v2098_v3  ;;  %529 = vst.msk [vmem:[#allocation2 + $0x69] sm:$0xff] %vm278_vm2, %v480_v43  ;;  %v1393_v0 = vmul.f32 %v2119_v25, %v2265_v52  ;;  %v2285_v17 = vld [vmem:[#allocation2 + $0x50] sm:$0xff] }
 0x17f   : > { %v2275_v11 = vadd.f32 %v2209_v36, %v1424_v35  ;;  %v1241_v27 = vadd.f32 %v1209_v41, %v1140_v23  ;;  %v1325_v40 = vadd.f32 %v1293_v30, %v1225_v42  ;;  %v512_v1 = vpop.trf.xlu1  ;;  %v2279_v8 = vld [vmem:[#allocation2 + $0x10a] sm:$0xff]  ;;  %v841_v13 = vadd.f32 %v809_v46, %v741_v32 }
 0x180   : > { %v825_v39 = vadd.f32 %v793_v61, %v725_v31  ;;  %v909_v55 = vmul.f32 %v2213_v38, %v2098_v3  ;;  %v993_v16 = vmul.f32 %v2190_v22, %v2105_v9  ;;  %545 = vst.msk [vmem:[#allocation2 + $0x129] sm:$0xff] %vm278_vm2, %v512_v1  ;;  %v1409_v35 = vmul.f32 %v2119_v25, %v2279_v8  ;;  %v2291_v42 = vld [vmem:[#allocation2 + $0x110] sm:$0xff] }
 0x181   : > { %3026 = vst [vmem:[#allocation13_spill] sm:$0xff] %v2275_v11  ;;  %v1341_v30 = vadd.f32 %v1309_v45, %v1241_v27  ;;  %v1425_v41 = vadd.f32 %v1393_v0, %v1325_v40  ;;  %v2293_v31 = vld [vmem:[#allocation2 + $0x51] sm:$0xff]  ;;  %v481_v32 = vpop.trf.xlu0  ;;  %v1009_v46 = vmul.f32 %v2228_v53, %v2105_v9  ;;  %v1093_v1 = vmul.f32 %v2204_v34, %v2109_v14  ;;  %v2341_v44 = vld [vmem:[#allocation2 + $0x60] sm:$0xff] }
 0x182   : > { %v925_v43 = vadd.f32 %v893_v10, %v825_v39  ;;  %v941_v61 = vadd.f32 %v909_v55, %v841_v13  ;;  %v2299_v33 = vld [vmem:[#allocation2 + $0x111] sm:$0xff]  ;;  %530 = vst.msk [vmem:[#allocation2 + $0x79] sm:$0xff] %vm278_vm2, %v481_v32  ;;  %v1109_v0 = vmul.f32 %v2230_v56, %v2109_v14  ;;  %v1194_v10 = vmul.f32 %v2113_v20, %v2285_v17 }
 0x183   : > { %v2301_v45 = vld [vmem:[#allocation2 + $0x52] sm:$0xff]  ;;  %v1441_v27 = vadd.f32 %v1409_v35, %v1341_v30  ;;  %v1463_v40 = vadd.f32 %v2209_v36, %v1425_v41  ;;  %v513_v13 = vpop.trf.xlu1  ;;  %v1210_v11 = vmul.f32 %v2113_v20, %v2291_v42  ;;  %v1294_v32 = vmul.f32 %v2115_v21, %v2293_v31 }
 0x184   : > { %v2309_v39 = vld [vmem:[#allocation2 + $0x112] sm:$0xff]  ;;  %v1025_v55 = vadd.f32 %v993_v16, %v925_v43  ;;  %v1041_v23 = vadd.f32 %v1009_v46, %v941_v61  ;;  %546 = vst.msk [vmem:[#allocation2 + $0x139] sm:$0xff] %vm278_vm2, %v513_v13  ;;  %v1310_v41 = vmul.f32 %v2115_v21, %v2299_v33  ;;  %v1394_v7 = vmul.f32 %v2119_v25, %v2301_v45 }
 0x185   : > { %v1479_v30 = vadd.f32 %v2209_v36, %v1441_v27  ;;  %v1495_v35 = vmax.f32 %v1463_v40, 0.0  ;;  %v482_v63 = vpop.trf.xlu0  ;;  %v1410_v61 = vmul.f32 %v2119_v25, %v2309_v39  ;;  %v594_v46 = vmul.f32 %v2150_v57, %v2081_v47 }
 0x186   : > { %v1125_v16 = vadd.f32 %v1093_v1, %v1025_v55  ;;  %v1141_v43 = vadd.f32 %v1109_v0, %v1041_v23  ;;  %531 = vst.msk [vmem:[#allocation2 + $0x81] sm:$0xff] %vm278_vm2, %v482_v63  ;;  %v610_v27 = vmul.f32 %v2169_v5, %v2081_v47  ;;  %v694_v40 = vmul.f32 %v2152_v58, %v2083_v48 }
 0x187   : > { %v1511_v13 = vmax.f32 %v1479_v30, 0.0  ;;  %v710_v62 = vmul.f32 %v2171_v6, %v2083_v48  ;;  %v514_v1 = vpop.trf.xlu1  ;;  %v794_v55 = vmul.f32 %v2186_v18, %v2087_v54  ;;  %v810_v57 = vmul.f32 %v2211_v37, %v2087_v54 }
 0x188   : > { %v1226_v23 = vadd.f32 %v1194_v10, %v1125_v16  ;;  %v1242_v0 = vadd.f32 %v1210_v11, %v1141_v43  ;;  %547 = vst.msk [vmem:[#allocation2 + $0x141] sm:$0xff] %vm278_vm2, %v514_v1  ;;  %v726_v5 = vadd.f32 %v694_v40, %v594_v46  ;;  %v894_v58 = vmul.f32 %v2242_v2, %v2098_v3  ;;  %v2347_v16 = vld [vmem:[#allocation2 + $0x120] sm:$0xff] }
 0x189   : > { %v2337_v63 = vpack.i.bf16 %v1495_v35, %v1511_v13  ;;  %v742_v30 = vadd.f32 %v710_v62, %v610_v27  ;;  %v483_v6 = vpop.trf.xlu0  ;;  %v910_v18 = vmul.f32 %v2252_v24, %v2098_v3  ;;  %v994_v37 = vmul.f32 %v2244_v4, %v2105_v9  ;;  %v2349_v35 = vld [vmem:[#allocation2 + $0x61] sm:$0xff] }
 0x18a   : > { %v1326_v10 = vadd.f32 %v1294_v32, %v1226_v23  ;;  %v1342_v11 = vadd.f32 %v1310_v41, %v1242_v0  ;;  %532 = vst.msk [vmem:[#allocation2 + $0x91] sm:$0xff] %vm278_vm2, %v483_v6  ;;  %v826_v62 = vadd.f32 %v794_v55, %v726_v5  ;;  %v1010_v46 = vmul.f32 %v2254_v26, %v2105_v9  ;;  %v2356_v41 = vld [vmem:[#allocation2 + $0x121] sm:$0xff] }
 0x18b   : > { %3027 = vst [vmem:[#allocation14_spill] sm:$0xff] %v2337_v63  ;;  %v842_v43 = vadd.f32 %v810_v57, %v742_v30  ;;  %v1094_v32 = vmul.f32 %v2265_v52, %v2109_v14  ;;  %v2358_v13 = vld [vmem:[#allocation2 + $0x62] sm:$0xff]  ;;  %v515_v27 = vpop.trf.xlu1  ;;  %v1110_v23 = vmul.f32 %v2279_v8, %v2109_v14  ;;  %v1195_v0 = vmul.f32 %v2113_v20, %v2341_v44 }
 0x18c   : > { %v1426_v40 = vadd.f32 %v1394_v7, %v1326_v10  ;;  %v1442_v1 = vadd.f32 %v1410_v61, %v1342_v11  ;;  %v2364_v55 = vld [vmem:[#allocation2 + $0x122] sm:$0xff]  ;;  %548 = vst.msk [vmem:[#allocation2 + $0x151] sm:$0xff] %vm278_vm2, %v515_v27  ;;  %v926_v57 = vadd.f32 %v894_v58, %v826_v62  ;;  %v1211_v30 = vmul.f32 %v2113_v20, %v2347_v16 }
 0x18d   : > { %v942_v5 = vadd.f32 %v910_v18, %v842_v43  ;;  %v1295_v6 = vmul.f32 %v2115_v21, %v2349_v35  ;;  %v484_v7 = vpop.trf.xlu0  ;;  %v1311_v11 = vmul.f32 %v2115_v21, %v2356_v41  ;;  %v1395_v63 = vmul.f32 %v2119_v25, %v2358_v13 }
 0x18e   : > { %v1464_v61 = vadd.f32 %v2209_v36, %v1426_v40  ;;  %v1480_v10 = vadd.f32 %v2209_v36, %v1442_v1  ;;  %533 = vst.msk [vmem:[#allocation2 + $0x99] sm:$0xff] %vm278_vm2, %v484_v7  ;;  %v1026_v58 = vadd.f32 %v994_v37, %v926_v57  ;;  %v1411_v62 = vmul.f32 %v2119_v25, %v2364_v55 }
 0x18f   : > { %v1042_v18 = vadd.f32 %v1010_v46, %v942_v5  ;;  %v595_v43 = vmul.f32 %v2188_v19, %v2081_v47  ;;  %v516_v27 = vpop.trf.xlu1  ;;  %v611_v1 = vmul.f32 %v2213_v38, %v2081_v47  ;;  %v695_v15 = vmul.f32 %v2190_v22, %v2083_v48 }
 0x190   : > { %v1496_v40 = vmax.f32 %v1464_v61, 0.0  ;;  %v1512_v50 = vmax.f32 %v1480_v10, 0.0  ;;  %549 = vst.msk [vmem:[#allocation2 + $0x159] sm:$0xff] %vm278_vm2, %v516_v27  ;;  %v1126_v7 = vadd.f32 %v1094_v32, %v1026_v58  ;;  %v711_v46 = vmul.f32 %v2228_v53, %v2083_v48  ;;  %v2400_v58 = vld [vmem:[#allocation2 + $0x68] sm:$0xff] }
 0x191   : > { %v1142_v37 = vadd.f32 %v1110_v23, %v1042_v18  ;;  %v795_v57 = vmul.f32 %v2204_v34, %v2087_v54  ;;  %v485_v19 = vpop.trf.xlu0  ;;  %v727_v61 = vadd.f32 %v695_v15, %v595_v43  ;;  %v811_v38 = vmul.f32 %v2230_v56, %v2087_v54  ;;  %v2402_v34 = vld [vmem:[#allocation2 + $0x128] sm:$0xff] }
 0x192   : > { %v2391_v5 = vpack.i.bf16 %v1496_v40, %v1512_v50  ;;  %v895_v22 = vmul.f32 %v2285_v17, %v2098_v3  ;;  %534 = vst.msk [vmem:[#allocation2 + $0xa9] sm:$0xff] %vm278_vm2, %v485_v19  ;;  %v1227_v32 = vadd.f32 %v1195_v0, %v1126_v7  ;;  %v743_v10 = vadd.f32 %v711_v46, %v611_v1  ;;  %v2404_v50 = vld [vmem:[#allocation2 + $0x69] sm:$0xff] }
 0x193   : > { %v1243_v23 = vadd.f32 %v1211_v30, %v1142_v37  ;;  %v911_v53 = vmul.f32 %v2291_v42, %v2098_v3  ;;  %v517_v15 = vpop.trf.xlu1  ;;  %v827_v18 = vadd.f32 %v795_v57, %v727_v61  ;;  %v995_v56 = vmul.f32 %v2293_v31, %v2105_v9  ;;  %v2412_v30 = vld [vmem:[#allocation2 + $0x129] sm:$0xff] }
 0x194   : > { %3028 = vst [vmem:[#allocation15_spill] sm:$0xff] %v2391_v5  ;;  %v1011_v43 = vmul.f32 %v2299_v33, %v2105_v9  ;;  %v1095_v0 = vmul.f32 %v2301_v45, %v2109_v14  ;;  %550 = vst.msk [vmem:[#allocation2 + $0x169] sm:$0xff] %vm278_vm2, %v517_v15  ;;  %v1327_v27 = vadd.f32 %v1295_v6, %v1227_v32  ;;  %v2417_v37 = vld [vmem:[#allocation2 + $0x6a] sm:$0xff] }
 0x195   : > { %v1343_v40 = vadd.f32 %v1311_v11, %v1243_v23  ;;  %v843_v1 = vadd.f32 %v811_v38, %v743_v10  ;;  %v1111_v7 = vmul.f32 %v2309_v39, %v2109_v14  ;;  %v2419_v46 = vld [vmem:[#allocation2 + $0x12a] sm:$0xff]  ;;  %v486_v57 = vpop.trf.xlu0  ;;  %v927_v19 = vadd.f32 %v895_v22, %v827_v18 }
 0x196   : > { %v1196_v61 = vmul.f32 %v2113_v20, %v2400_v58  ;;  %v1212_v5 = vmul.f32 %v2113_v20, %v2402_v34  ;;  %v1296_v6 = vmul.f32 %v2115_v21, %v2404_v50  ;;  %535 = vst.msk [vmem:[#allocation2 + $0xb1] sm:$0xff] %vm278_vm2, %v486_v57  ;;  %v1427_v11 = vadd.f32 %v1395_v63, %v1327_v27 }
 0x197   : > { %v1443_v38 = vadd.f32 %v1411_v62, %v1343_v40  ;;  %v943_v32 = vadd.f32 %v911_v53, %v843_v1  ;;  %v1312_v23 = vmul.f32 %v2115_v21, %v2412_v30  ;;  %v518_v10 = vpop.trf.xlu1  ;;  %v1027_v15 = vadd.f32 %v995_v56, %v927_v19 }
 0x198   : > { %v1396_v22 = vmul.f32 %v2119_v25, %v2417_v37  ;;  %v1412_v18 = vmul.f32 %v2119_v25, %v2419_v46  ;;  %v596_v60 = vmul.f32 %v2242_v2, %v2081_v47  ;;  %551 = vst.msk [vmem:[#allocation2 + $0x171] sm:$0xff] %vm278_vm2, %v518_v10  ;;  %v1465_v63 = vadd.f32 %v2209_v36, %v1427_v11 }
 0x199   : > { %v1481_v62 = vadd.f32 %v2209_v36, %v1443_v38  ;;  %v1043_v53 = vadd.f32 %v1011_v43, %v943_v32  ;;  %v612_v27 = vmul.f32 %v2252_v24, %v2081_v47  ;;  %v487_v56 = vpop.trf.xlu0  ;;  %v1127_v40 = vadd.f32 %v1095_v0, %v1027_v15  ;;  %v2452_v15 = vld [vmem:[#allocation2 + $0x78] sm:$0xff] }
 0x19a   : > { %v696_v1 = vmul.f32 %v2244_v4, %v2083_v48  ;;  %v712_v57 = vmul.f32 %v2254_v26, %v2083_v48  ;;  %v796_v2 = vmul.f32 %v2265_v52, %v2087_v54  ;;  %536 = vst.msk [vmem:[#allocation2 + $0xc1] sm:$0xff] %vm278_vm2, %v487_v56  ;;  %v1497_v19 = vmax.f32 %v1465_v63, 0.0  ;;  %v2461_v63 = vld [vmem:[#allocation2 + $0x138] sm:$0xff] }
 0x19b   : > { %v1513_v11 = vmax.f32 %v1481_v62, 0.0  ;;  %v1143_v38 = vadd.f32 %v1111_v7, %v1043_v53  ;;  %v812_v43 = vmul.f32 %v2279_v8, %v2087_v54  ;;  %v519_v24 = vpop.trf.xlu1  ;;  %v1228_v32 = vadd.f32 %v1196_v61, %v1127_v40  ;;  %v2465_v56 = vld [vmem:[#allocation2 + $0x79] sm:$0xff] }
 0x19c   : > { %v728_v0 = vadd.f32 %v696_v1, %v596_v60  ;;  %v744_v10 = vadd.f32 %v712_v57, %v612_v27  ;;  %v896_v4 = vmul.f32 %v2341_v44, %v2098_v3  ;;  %552 = vst.msk [vmem:[#allocation2 + $0x181] sm:$0xff] %vm278_vm2, %v519_v24  ;;  %v912_v7 = vmul.f32 %v2347_v16, %v2098_v3  ;;  %v2467_v40 = vld [vmem:[#allocation2 + $0x139] sm:$0xff] }
 0x19d   : > { %v2455_v26 = vpack.i.bf16 %v1497_v19, %v1513_v11  ;;  %v1244_v52 = vadd.f32 %v1212_v5, %v1143_v38  ;;  %v996_v8 = vmul.f32 %v2349_v35, %v2105_v9  ;;  %v488_v60 = vpop.trf.xlu0  ;;  %v1328_v61 = vadd.f32 %v1296_v6, %v1228_v32  ;;  %3030 = vst [vmem:[#allocation17_spill] sm:$0xff] %v2465_v56  ;;  %v2469_v5 = vld [vmem:[#allocation2 + $0x7a] sm:$0xff] }
 0x19e   : > { %v828_v62 = vadd.f32 %v796_v2, %v728_v0  ;;  %v844_v53 = vadd.f32 %v812_v43, %v744_v10  ;;  %v1012_v27 = vmul.f32 %v2356_v41, %v2105_v9  ;;  %3031 = vst [vmem:[#allocation18_spill] sm:$0xff] %v2467_v40  ;;  %3032 = vst [vmem:[#allocation19_spill] sm:$0xff] %v2469_v5  ;;  %v2478_v19 = vld [vmem:[#allocation2 + $0x13a] sm:$0xff] }
 0x19f   : > { %3029 = vst [vmem:[#allocation16_spill] sm:$0xff] %v2455_v26  ;;  %537 = vst.msk [vmem:[#allocation2 + $0xc9] sm:$0xff] %vm278_vm2, %v488_v60  ;;  %v1344_v1 = vadd.f32 %v1312_v23, %v1244_v52  ;;  %v1096_v57 = vmul.f32 %v2358_v13, %v2109_v14  ;;  %v1112_v6 = vmul.f32 %v2364_v55, %v2109_v14  ;;  %v520_v11 = vpop.trf.xlu1 }
 0x1a0   : > { %v1197_v2 = vmul.f32 %v2113_v20, %v2452_v15  ;;  %3033 = vst [vmem:[#allocation20_spill] sm:$0xff] %v2478_v19  ;;  %v1428_v38 = vadd.f32 %v1396_v22, %v1328_v61  ;;  %v928_v43 = vadd.f32 %v896_v4, %v828_v62  ;;  %v944_v24 = vadd.f32 %v912_v7, %v844_v53 }
 0x1a1   : > { %v1213_v32 = vmul.f32 %v2113_v20, %v2461_v63  ;;  %553 = vst.msk [vmem:[#allocation2 + $0x189] sm:$0xff] %vm278_vm2, %v520_v11  ;;  %v1444_v23 = vadd.f32 %v1412_v18, %v1344_v1  ;;  %v1297_v0 = vmul.f32 %v2115_v21, %v2465_v56  ;;  %v1313_v10 = vmul.f32 %v2115_v21, %v2467_v40  ;;  %v570_v60 = vld [vmem:[#allocation2 + $0xc0] sm:$0xff] }
 0x1a2   : > { %v1397_v52 = vmul.f32 %v2119_v25, %v2469_v5  ;;  %v670_v26 = vld [vmem:[#allocation2 + $0xc1] sm:$0xff]  ;;  %v1466_v22 = vadd.f32 %v2209_v36, %v1428_v38  ;;  %v1028_v4 = vadd.f32 %v996_v8, %v928_v43  ;;  %v1044_v7 = vadd.f32 %v1012_v27, %v944_v24 }
 0x1a3   : > { %v1413_v61 = vmul.f32 %v2119_v25, %v2478_v19  ;;  %v606_v18 = vmul.f32 %v2081_v47, %v570_v60  ;;  %v706_v62 = vmul.f32 %v2083_v48, %v670_v26  ;;  %v1482_v53 = vadd.f32 %v2209_v36, %v1444_v23 }
 0x1a4   : > { %v597_v1 = vmul.f32 %v2285_v17, %v2081_v47  ;;  %v1498_v11 = vmax.f32 %v1466_v22, 0.0  ;;  %v1128_v5 = vadd.f32 %v1096_v57, %v1028_v4  ;;  %v1144_v40 = vadd.f32 %v1112_v6, %v1044_v7 }
 0x1a5   : > { %v613_v38 = vmul.f32 %v2291_v42, %v2081_v47  ;;  %v738_v8 = vadd.f32 %v706_v62, %v606_v18  ;;  %v1514_v27 = vmax.f32 %v1482_v53, 0.0  ;;  %v697_v43 = vmul.f32 %v2293_v31, %v2083_v48 }
 0x1a6   : > { %v713_v24 = vmul.f32 %v2299_v33, %v2083_v48  ;;  %v770_v26 = vld [vmem:[#allocation2 + $0xc2] sm:$0xff]  ;;  %v1229_v19 = vadd.f32 %v1197_v2, %v1128_v5  ;;  %v1245_v56 = vadd.f32 %v1213_v32, %v1144_v40  ;;  %v797_v17 = vmul.f32 %v2301_v45, %v2087_v54  ;;  %v771_v22 = vld [vmem:[#allocation2 + $0xca] sm:$0xff] }
 0x1a7   : > { %v571_v60 = vld [vmem:[#allocation2 + $0xc8] sm:$0xff]  ;;  %v813_v57 = vmul.f32 %v2309_v39, %v2087_v54  ;;  %v806_v42 = vmul.f32 %v2087_v54, %v770_v26  ;;  %v2510_v4 = vpack.i.bf16 %v1498_v11, %v1514_v27  ;;  %v807_v33 = vmul.f32 %v2087_v54, %v771_v22 }
 0x1a8   : > { %v671_v23 = vld [vmem:[#allocation2 + $0xc9] sm:$0xff]  ;;  %v607_v6 = vmul.f32 %v2081_v47, %v571_v60  ;;  %v1329_v7 = vadd.f32 %v1297_v0, %v1229_v19  ;;  %v1345_v5 = vadd.f32 %v1313_v10, %v1245_v56  ;;  %v729_v40 = vadd.f32 %v697_v43, %v597_v1  ;;  %v2530_v43 = vld [vmem:[#allocation2 + $0x140] sm:$0xff] }
 0x1a9   : > { %v707_v31 = vmul.f32 %v2083_v48, %v671_v23  ;;  %v838_v2 = vadd.f32 %v806_v42, %v738_v8  ;;  %v745_v45 = vadd.f32 %v713_v24, %v613_v38  ;;  %v897_v39 = vmul.f32 %v2400_v58, %v2098_v3  ;;  %v2532_v24 = vld [vmem:[#allocation2 + $0x81] sm:$0xff] }
 0x1aa   : > { %v1429_v18 = vadd.f32 %v1397_v52, %v1329_v7  ;;  %v1445_v62 = vadd.f32 %v1413_v61, %v1345_v5  ;;  %v829_v53 = vadd.f32 %v797_v17, %v729_v40  ;;  %v913_v26 = vmul.f32 %v2402_v34, %v2098_v3  ;;  %v2524_v61 = vld [vmem:[#allocation2 + $0x80] sm:$0xff] }
 0x1ab   : > { %v739_v32 = vadd.f32 %v707_v31, %v607_v6  ;;  %v938_v11 = vadd.f32 %v2123_v28, %v838_v2  ;;  %v845_v60 = vadd.f32 %v813_v57, %v745_v45  ;;  %v997_v56 = vmul.f32 %v2404_v50, %v2105_v9  ;;  %v2536_v6 = vld [vmem:[#allocation2 + $0x141] sm:$0xff] }
 0x1ac   : > { %v1467_v19 = vadd.f32 %v2209_v36, %v1429_v18  ;;  %v1483_v0 = vadd.f32 %v2209_v36, %v1445_v62  ;;  %v929_v10 = vadd.f32 %v897_v39, %v829_v53  ;;  %v1013_v52 = vmul.f32 %v2412_v30, %v2105_v9  ;;  %v2544_v7 = vld [vmem:[#allocation2 + $0x142] sm:$0xff] }
 0x1ad   : > { %v839_v27 = vadd.f32 %v807_v33, %v739_v32  ;;  %v1038_v1 = vadd.f32 %v2126_v29, %v938_v11  ;;  %v945_v28 = vadd.f32 %v913_v26, %v845_v60  ;;  %v1097_v8 = vmul.f32 %v2417_v37, %v2109_v14  ;;  %v2542_v33 = vld [vmem:[#allocation2 + $0x82] sm:$0xff] }
 0x1ae   : > { %v1499_v23 = vmax.f32 %v1467_v19, 0.0  ;;  %v1515_v17 = vmax.f32 %v1483_v0, 0.0  ;;  %v1029_v57 = vadd.f32 %v997_v56, %v929_v10  ;;  %v1113_v42 = vmul.f32 %v2419_v46, %v2109_v14  ;;  %v3036_v56 = vld [vmem:[#allocation9_spill] sm:$0xff] }
 0x1af   : > { %v939_v38 = vadd.f32 %v2146_v51, %v839_v27  ;;  %v1138_v29 = vadd.f32 %v2143_v49, %v1038_v1  ;;  %v1045_v31 = vadd.f32 %v1013_v52, %v945_v28  ;;  %v1198_v22 = vmul.f32 %v2113_v20, %v2524_v61  ;;  %v3035_v27 = vld [vmem:[#allocation7_spill] sm:$0xff]  ;;  %v3037_v28 = vld [vmem:[#allocation8_spill] sm:$0xff] }
 0x1b0   : > { %v2546_v5 = vpack.i.bf16 %v1499_v23, %v1515_v17  ;;  %v1129_v40 = vadd.f32 %v1097_v8, %v1029_v57  ;;  %v1214_v2 = vmul.f32 %v2113_v20, %v2530_v43  ;;  %v1298_v32 = vmul.f32 %v2115_v21, %v2532_v24  ;;  %v3038_v8 = vld [vmem:[#allocation10_spill] sm:$0xff] }
 0x1b1   : > { %v1039_v51 = vadd.f32 %v2155_v59, %v939_v38  ;;  %v1239_v49 = vadd.f32 %v2180_v12, %v1138_v29  ;;  %v3034_v59 = vld [vmem:[#allocation6_spill] sm:$0xff]  ;;  %v1145_v39 = vadd.f32 %v1113_v42, %v1045_v31  ;;  %v1314_v18 = vmul.f32 %v2115_v21, %v2536_v6 }
 0x1b2   : > { %v1230_v62 = vadd.f32 %v1198_v22, %v1129_v40  ;;  %v1398_v53 = vmul.f32 %v2119_v25, %v2542_v33  ;;  %v1414_v26 = vmul.f32 %v2119_v25, %v2544_v7  ;;  %v598_v11 = vmul.f32 %v2341_v44, %v2081_v47 }
 0x1b3   : > { %v1139_v45 = vadd.f32 %v3034_v59, %v1039_v51  ;;  %v1339_v60 = vadd.f32 %v3035_v27, %v1239_v49  ;;  %v1246_v19 = vadd.f32 %v1214_v2, %v1145_v39  ;;  %v614_v0 = vmul.f32 %v2347_v16, %v2081_v47 }
 0x1b4   : > { %v1330_v10 = vadd.f32 %v1298_v32, %v1230_v62  ;;  %v698_v52 = vmul.f32 %v2349_v35, %v2083_v48  ;;  %v714_v1 = vmul.f32 %v2356_v41, %v2083_v48  ;;  %v798_v38 = vmul.f32 %v2358_v13, %v2087_v54  ;;  %v3039_v41 = vld [vmem:[#allocation11_spill] sm:$0xff] }
 0x1b5   : > { %v1240_v12 = vadd.f32 %v3036_v56, %v1139_v45  ;;  %v1439_v44 = vadd.f32 %v3037_v28, %v1339_v60  ;;  %v1346_v17 = vadd.f32 %v1314_v18, %v1246_v19  ;;  %v814_v57 = vmul.f32 %v2364_v55, %v2087_v54  ;;  %v3040_v55 = vld [vmem:[#allocation17_spill] sm:$0xff]  ;;  %v3041_v18 = vld [vmem:[#allocation18_spill] sm:$0xff]  ;;  %v3042_v56 = vld [vmem:[#allocation19_spill] sm:$0xff] }
 0x1b6   : > { %v1430_v42 = vadd.f32 %v1398_v53, %v1330_v10  ;;  %v730_v16 = vadd.f32 %v698_v52, %v598_v11  ;;  %v746_v29 = vadd.f32 %v714_v1, %v614_v0  ;;  %v898_v35 = vmul.f32 %v2452_v15, %v2098_v3  ;;  %v2589_v53 = vld [vmem:[#allocation2 + $0x90] sm:$0xff]  ;;  %v3043_v10 = vld [vmem:[#allocation12_spill] sm:$0xff] }
 0x1b7   : > { %v1340_v23 = vadd.f32 %v3038_v8, %v1240_v12  ;;  %v1477_v51 = vadd.f32 %v2209_v36, %v1439_v44  ;;  %v1446_v22 = vadd.f32 %v1414_v26, %v1346_v17  ;;  %v914_v13 = vmul.f32 %v2461_v63, %v2098_v3  ;;  %v2591_v26 = vld [vmem:[#allocation2 + $0x150] sm:$0xff]  ;;  %v3045_v44 = vld [vmem:[#allocation20_spill] sm:$0xff] }
 0x1b8   : > { %v1468_v40 = vadd.f32 %v2209_v36, %v1430_v42  ;;  %v830_v2 = vadd.f32 %v798_v38, %v730_v16  ;;  %v846_v32 = vadd.f32 %v814_v57, %v746_v29  ;;  %v998_v49 = vmul.f32 %v3040_v55, %v2105_v9  ;;  %v2595_v19 = vld [vmem:[#allocation2 + $0x91] sm:$0xff] }
 0x1b9   : > { %v1440_v31 = vadd.f32 %v3039_v41, %v1340_v23  ;;  %v1509_v59 = vmax.f32 %v1477_v51, 0.0  ;;  %v1484_v39 = vadd.f32 %v2209_v36, %v1446_v22  ;;  %v1014_v62 = vmul.f32 %v3041_v18, %v2105_v9  ;;  %v2597_v0 = vld [vmem:[#allocation2 + $0x151] sm:$0xff] }
 0x1ba   : > { %v1500_v11 = vmax.f32 %v1468_v40, 0.0  ;;  %v930_v27 = vadd.f32 %v898_v35, %v830_v2  ;;  %v946_v60 = vadd.f32 %v914_v13, %v846_v32  ;;  %v1098_v12 = vmul.f32 %v3042_v56, %v2109_v14  ;;  %v2603_v23 = vld [vmem:[#allocation2 + $0x92] sm:$0xff]  ;;  %v3046_v35 = vld [vmem:[#allocation13_spill] sm:$0xff] }
 0x1bb   : > { %v1478_v45 = vadd.f32 %v2209_v36, %v1440_v31  ;;  %v3044_v52 = vmax.f32 %v3043_v10, 0.0  ;;  %v1516_v28 = vmax.f32 %v1484_v39, 0.0  ;;  %v1114_v8 = vmul.f32 %v3045_v44, %v2109_v14  ;;  %v2605_v17 = vld [vmem:[#allocation2 + $0x152] sm:$0xff] }
 0x1bc   : > { %v1030_v57 = vadd.f32 %v998_v49, %v930_v27  ;;  %v1046_v42 = vadd.f32 %v1014_v62, %v946_v60  ;;  %v1199_v16 = vmul.f32 %v2113_v20, %v2589_v53  ;;  %v1215_v29 = vmul.f32 %v2113_v20, %v2591_v26 }
 0x1bd   : > { %v1784_v1 = vpack.i.bf16 %v3044_v52, %v1509_v59  ;;  %v1510_v38 = vmax.f32 %v1478_v45, 0.0  ;;  %v3047_v51 = vmax.f32 %v3046_v35, 0.0  ;;  %v2613_v31 = vpack.i.bf16 %v1500_v11, %v1516_v28  ;;  %v2639_v52 = vld [vmem:[#allocation2 + $0x98] sm:$0xff] }
 0x1be   : > { %v1299_v22 = vmul.f32 %v2115_v21, %v2595_v19  ;;  %v1315_v13 = vmul.f32 %v2115_v21, %v2597_v0  ;;  %v1130_v40 = vadd.f32 %v1098_v12, %v1030_v57  ;;  %v1146_v2 = vadd.f32 %v1114_v8, %v1046_v42  ;;  %v2647_v28 = vld [vmem:[#allocation2 + $0x99] sm:$0xff] }
 0x1bf   : > { %1785 = vxpose.xlu0.b32.start [1/16] (narrow) %v1784_v1, 32  ;;  %v1786_v41 = vpack.i.bf16 %v3047_v51, %v1510_v38  ;;  %v1399_v32 = vmul.f32 %v2119_v25, %v2603_v23  ;;  %v1415_v49 = vmul.f32 %v2119_v25, %v2605_v17  ;;  %v599_v59 = vmul.f32 %v2400_v58, %v2081_v47  ;;  %v2649_v8 = vld [vmem:[#allocation2 + $0x159] sm:$0xff] }
 0x1c0   : > { %v615_v45 = vmul.f32 %v2402_v34, %v2081_v47  ;;  %v699_v39 = vmul.f32 %v2404_v50, %v2083_v48  ;;  %v715_v62 = vmul.f32 %v2412_v30, %v2083_v48  ;;  %v1231_v11 = vadd.f32 %v1199_v16, %v1130_v40  ;;  %v2641_v30 = vld [vmem:[#allocation2 + $0x158] sm:$0xff] }
 0x1c1   : > { %v1247_v27 = vadd.f32 %v1215_v29, %v1146_v2  ;;  %v799_v60 = vmul.f32 %v2417_v37, %v2087_v54  ;;  %v815_v12 = vmul.f32 %v2419_v46, %v2087_v54  ;;  %v899_v34 = vmul.f32 %v2524_v61, %v2098_v3  ;;  %v2655_v35 = vld [vmem:[#allocation2 + $0x9a] sm:$0xff]  ;;  %v3048_v2 = vld [vmem:[#allocation14_spill] sm:$0xff] }
 0x1c2   : > { %v731_v10 = vadd.f32 %v699_v39, %v599_v59  ;;  %v747_v58 = vadd.f32 %v715_v62, %v615_v45  ;;  %v915_v50 = vmul.f32 %v2530_v43, %v2098_v3  ;;  %v1331_v1 = vadd.f32 %v1299_v22, %v1231_v11  ;;  %v2657_v51 = vld [vmem:[#allocation2 + $0x15a] sm:$0xff] }
 0x1c3   : > { %1787 = vxpose.xlu0.b32.cont [2/16] (narrow) %v1786_v41, 32  ;;  %v1347_v38 = vadd.f32 %v1315_v13, %v1247_v27  ;;  %v999_v37 = vmul.f32 %v2532_v24, %v2105_v9  ;;  %v1015_v46 = vmul.f32 %v2536_v6, %v2105_v9  ;;  %v1099_v16 = vmul.f32 %v2542_v33, %v2109_v14 }
 0x1c4   : > { %v831_v57 = vadd.f32 %v799_v60, %v731_v10  ;;  %v847_v42 = vadd.f32 %v815_v12, %v747_v58  ;;  %v1115_v29 = vmul.f32 %v2544_v7, %v2109_v14  ;;  %v1431_v41 = vadd.f32 %v1399_v32, %v1331_v1 }
 0x1c5   : > { %v1447_v22 = vadd.f32 %v1415_v49, %v1347_v38  ;;  %v1200_v13 = vmul.f32 %v2113_v20, %v2639_v52  ;;  %v1216_v40 = vmul.f32 %v2113_v20, %v2641_v30  ;;  %v1300_v39 = vmul.f32 %v2115_v21, %v2647_v28 }
 0x1c6   : > { %v931_v59 = vadd.f32 %v899_v34, %v831_v57  ;;  %v947_v45 = vadd.f32 %v915_v50, %v847_v42  ;;  %v1316_v62 = vmul.f32 %v2115_v21, %v2649_v8  ;;  %v1469_v11 = vadd.f32 %v2209_v36, %v1431_v41  ;;  %v3049_v57 = vld [vmem:[#allocation15_spill] sm:$0xff] }
 0x1c7   : > { %1789 = vxpose.xlu0.b32.cont [3/16] (narrow) %v3048_v2, 32  ;;  %v1485_v32 = vadd.f32 %v2209_v36, %v1447_v22  ;;  %v1400_v49 = vmul.f32 %v2119_v25, %v2655_v35  ;;  %v1416_v27 = vmul.f32 %v2119_v25, %v2657_v51  ;;  %v600_v10 = vmul.f32 %v2452_v15, %v2081_v47  ;;  %v2691_v2 = vld [vmem:[#allocation2 + $0xa8] sm:$0xff] }
 0x1c8   : > { %v1031_v60 = vadd.f32 %v999_v37, %v931_v59  ;;  %v1047_v12 = vadd.f32 %v1015_v46, %v947_v45  ;;  %v616_v58 = vmul.f32 %v2461_v63, %v2081_v47  ;;  %v1501_v34 = vmax.f32 %v1469_v11, 0.0 }
 0x1c9   : > { %v1517_v50 = vmax.f32 %v1485_v32, 0.0  ;;  %v700_v1 = vmul.f32 %v3040_v55, %v2083_v48  ;;  %v716_v38 = vmul.f32 %v3041_v18, %v2083_v48  ;;  %v800_v37 = vmul.f32 %v3042_v56, %v2087_v54 }
 0x1ca   : > { %v1131_v42 = vadd.f32 %v1099_v16, %v1031_v60  ;;  %v1147_v41 = vadd.f32 %v1115_v29, %v1047_v12  ;;  %v816_v15 = vmul.f32 %v3045_v44, %v2087_v54  ;;  %v900_v55 = vmul.f32 %v2589_v53, %v2098_v3  ;;  %v2697_v29 = vld [vmem:[#allocation2 + $0x168] sm:$0xff]  ;;  %v3050_v12 = vld [vmem:[#allocation16_spill] sm:$0xff] }
 0x1cb   : > { %1791 = vxpose.xlu0.b32.cont [4/16] (narrow) %v3049_v57, 32  ;;  %v2687_v46 = vpack.i.bf16 %v1501_v34, %v1517_v50  ;;  %v732_v63 = vadd.f32 %v700_v1, %v600_v10  ;;  %v748_v22 = vadd.f32 %v716_v38, %v616_v58  ;;  %v916_v16 = vmul.f32 %v2591_v26, %v2098_v3  ;;  %v2699_v44 = vld [vmem:[#allocation2 + $0xa9] sm:$0xff] }
 0x1cc   : > { %v1232_v18 = vadd.f32 %v1200_v13, %v1131_v42  ;;  %v1248_v59 = vadd.f32 %v1216_v40, %v1147_v41  ;;  %v1000_v56 = vmul.f32 %v2595_v19, %v2105_v9  ;;  %v1016_v32 = vmul.f32 %v2597_v0, %v2105_v9  ;;  %v2705_v13 = vld [vmem:[#allocation2 + $0x169] sm:$0xff] }
 0x1cd   : > { %v832_v45 = vadd.f32 %v800_v37, %v732_v63  ;;  %v848_v11 = vadd.f32 %v816_v15, %v748_v22  ;;  %v1100_v60 = vmul.f32 %v2603_v23, %v2109_v14  ;;  %v2707_v40 = vld [vmem:[#allocation2 + $0xaa] sm:$0xff]  ;;  %v1116_v34 = vmul.f32 %v2605_v17, %v2109_v14 }
 0x1ce   : > { %v1332_v10 = vadd.f32 %v1300_v39, %v1232_v18  ;;  %v1348_v58 = vadd.f32 %v1316_v62, %v1248_v59  ;;  %v1201_v50 = vmul.f32 %v2113_v20, %v2691_v2  ;;  %v2714_v1 = vld [vmem:[#allocation2 + $0x16a] sm:$0xff]  ;;  %v1217_v42 = vmul.f32 %v2113_v20, %v2697_v29 }
 0x1cf   : > { %1793 = vxpose.xlu0.b32.cont [5/16] (narrow) %v3050_v12, 32  ;;  %v932_v38 = vadd.f32 %v900_v55, %v832_v45  ;;  %v948_v57 = vadd.f32 %v916_v16, %v848_v11  ;;  %v1301_v41 = vmul.f32 %v2115_v21, %v2699_v44  ;;  %v1317_v39 = vmul.f32 %v2115_v21, %v2705_v13 }
 0x1d0   : > { %v1432_v37 = vadd.f32 %v1400_v49, %v1332_v10  ;;  %v1448_v15 = vadd.f32 %v1416_v27, %v1348_v58  ;;  %v1401_v62 = vmul.f32 %v2119_v25, %v2707_v40  ;;  %v1417_v55 = vmul.f32 %v2119_v25, %v2714_v1 }
 0x1d1   : > { %v1032_v63 = vadd.f32 %v1000_v56, %v932_v38  ;;  %v1048_v22 = vadd.f32 %v1016_v32, %v948_v57  ;;  %v601_v18 = vmul.f32 %v2524_v61, %v2081_v47  ;;  %v617_v27 = vmul.f32 %v2530_v43, %v2081_v47  ;;  %v2750_v57 = vld [vmem:[#allocation2 + $0x170] sm:$0xff] }
 0x1d2   : > { %v1470_v59 = vadd.f32 %v2209_v36, %v1432_v37  ;;  %v1486_v49 = vadd.f32 %v2209_v36, %v1448_v15  ;;  %v701_v16 = vmul.f32 %v2532_v24, %v2083_v48  ;;  %v717_v11 = vmul.f32 %v2536_v6, %v2083_v48  ;;  %v2754_v15 = vld [vmem:[#allocation2 + $0xb1] sm:$0xff] }
 0x1d3   : > { %1795 = vxpose.xlu0.b32.cont [6/16] (narrow) %v2510_v4, 32  ;;  %v1132_v56 = vadd.f32 %v1100_v60, %v1032_v63  ;;  %v1148_v45 = vadd.f32 %v1116_v34, %v1048_v22  ;;  %v801_v61 = vmul.f32 %v2542_v33, %v2087_v54  ;;  %v817_v36 = vmul.f32 %v2544_v7, %v2087_v54  ;;  %v2743_v60 = vld [vmem:[#allocation2 + $0xb0] sm:$0xff] }
 0x1d4   : > { %v1502_v32 = vmax.f32 %v1470_v59, 0.0  ;;  %v1518_v4 = vmax.f32 %v1486_v49, 0.0  ;;  %v733_v12 = vadd.f32 %v701_v16, %v601_v18  ;;  %v749_v43 = vadd.f32 %v717_v11, %v617_v27  ;;  %v2756_v63 = vld [vmem:[#allocation2 + $0x171] sm:$0xff] }
 0x1d5   : > { %v1233_v10 = vadd.f32 %v1201_v50, %v1132_v56  ;;  %v1249_v58 = vadd.f32 %v1217_v42, %v1148_v45  ;;  %v901_v24 = vmul.f32 %v2639_v52, %v2098_v3  ;;  %v917_v33 = vmul.f32 %v2641_v30, %v2098_v3 }
 0x1d6   : > { %v1802_v6 = vpack.i.bf16 %v1502_v32, %v1518_v4  ;;  %v833_v34 = vadd.f32 %v801_v61, %v733_v12  ;;  %v1001_v38 = vmul.f32 %v2647_v28, %v2105_v9  ;;  %v849_v42 = vadd.f32 %v817_v36, %v749_v43 }
 0x1d7   : > { %1797 = vxpose.xlu0.b32.cont [7/16] (narrow) %v2546_v5, 32  ;;  %v1333_v7 = vadd.f32 %v1301_v41, %v1233_v10  ;;  %v1349_v50 = vadd.f32 %v1317_v39, %v1249_v58  ;;  %v1017_v37 = vmul.f32 %v2649_v8, %v2105_v9  ;;  %v2758_v5 = vld [vmem:[#allocation2 + $0xb2] sm:$0xff]  ;;  %v1101_v18 = vmul.f32 %v2655_v35, %v2109_v14 }
 0x1d8   : > { %v933_v22 = vadd.f32 %v901_v24, %v833_v34  ;;  %v1117_v59 = vmul.f32 %v2657_v51, %v2109_v14  ;;  %v1202_v41 = vmul.f32 %v2113_v20, %v2743_v60  ;;  %v2766_v39 = vld [vmem:[#allocation2 + $0x172] sm:$0xff]  ;;  %v949_v16 = vadd.f32 %v917_v33, %v849_v42 }
 0x1d9   : > { %v1433_v49 = vadd.f32 %v1401_v62, %v1333_v7  ;;  %v1449_v27 = vadd.f32 %v1417_v55, %v1349_v50  ;;  %v1218_v56 = vmul.f32 %v2113_v20, %v2750_v57  ;;  %v1302_v11 = vmul.f32 %v2115_v21, %v2754_v15  ;;  %v2780_v62 = vld [vmem:[%s3003_s4] ss:$0 sm:$0xff] }
 0x1da   : > { %v1033_v45 = vadd.f32 %v1001_v38, %v933_v22  ;;  %v1318_v61 = vmul.f32 %v2115_v21, %v2756_v63  ;;  %v1402_v32 = vmul.f32 %v2119_v25, %v2758_v5  ;;  %v1418_v12 = vmul.f32 %v2119_v25, %v2766_v39 }
 0x1db   : > { %1799 = vxpose.xlu0.b32.cont [8/16] (narrow) %v2613_v31, 32  ;;  %v1471_v55 = vadd.f32 %v2780_v62, %v1433_v49  ;;  %v1487_v4 = vadd.f32 %v2780_v62, %v1449_v27  ;;  %v1049_v31 = vadd.f32 %v1017_v37, %v949_v16  ;;  %v602_v10 = vmul.f32 %v2589_v53, %v2081_v47  ;;  %v2809_v49 = vld [vmem:[#allocation2 + $0xc1] sm:$0xff] }
 0x1dc   : > { %v1133_v36 = vadd.f32 %v1101_v18, %v1033_v45  ;;  %v618_v58 = vmul.f32 %v2591_v26, %v2081_v47  ;;  %v702_v43 = vmul.f32 %v2595_v19, %v2083_v48  ;;  %v718_v38 = vmul.f32 %v2597_v0, %v2083_v48  ;;  %v2801_v18 = vld [vmem:[#allocation2 + $0xc0] sm:$0xff] }
 0x1dd   : > { %v1503_v24 = vmax.f32 %v1471_v55, 0.0  ;;  %v1519_v34 = vmax.f32 %v1487_v4, 0.0  ;;  %v1149_v33 = vadd.f32 %v1117_v59, %v1049_v31  ;;  %v802_v42 = vmul.f32 %v2603_v23, %v2087_v54  ;;  %v2807_v23 = vld [vmem:[#allocation2 + $0x180] sm:$0xff] }
 0x1de   : > { %v1234_v7 = vadd.f32 %v1202_v41, %v1133_v36  ;;  %v734_v50 = vadd.f32 %v702_v43, %v602_v10  ;;  %v818_v53 = vmul.f32 %v2605_v17, %v2087_v54  ;;  %v750_v22 = vadd.f32 %v718_v38, %v618_v58  ;;  %v2815_v45 = vld [vmem:[#allocation2 + $0x181] sm:$0xff] }
 0x1df   : > { %1801 = vxpose.xlu0.b32.cont [9/16] (narrow) %v2687_v46, 32  ;;  %v1804_v26 = vpack.i.bf16 %v1503_v24, %v1519_v34  ;;  %v1250_v37 = vadd.f32 %v1218_v56, %v1149_v33  ;;  %v902_v19 = vmul.f32 %v2691_v2, %v2098_v3  ;;  %v918_v46 = vmul.f32 %v2697_v29, %v2098_v3  ;;  %v2823_v36 = vld [vmem:[#allocation2 + $0x182] sm:$0xff] }
 0x1e0   : > { %v1334_v59 = vadd.f32 %v1302_v11, %v1234_v7  ;;  %v834_v0 = vadd.f32 %v802_v42, %v734_v50  ;;  %v1002_v41 = vmul.f32 %v2699_v44, %v2105_v9  ;;  %v850_v27 = vadd.f32 %v818_v53, %v750_v22  ;;  %v2817_v11 = vld [vmem:[#allocation2 + $0xc2] sm:$0xff] }
 0x1e1   : > { %v1350_v17 = vadd.f32 %v1318_v61, %v1250_v37  ;;  %v1018_v16 = vmul.f32 %v2705_v13, %v2105_v9  ;;  %v1102_v56 = vmul.f32 %v2707_v40, %v2109_v14  ;;  %v1118_v31 = vmul.f32 %v2714_v1, %v2109_v14 }
 0x1e2   : > { %v1434_v55 = vadd.f32 %v1402_v32, %v1334_v59  ;;  %v934_v4 = vadd.f32 %v902_v19, %v834_v0  ;;  %v1203_v61 = vmul.f32 %v2113_v20, %v2801_v18  ;;  %v950_v58 = vadd.f32 %v918_v46, %v850_v27 }
 0x1e3   : > { %1803 = vxpose.xlu0.b32.cont [10/16] (narrow) %v1802_v6, 32  ;;  %v1450_v10 = vadd.f32 %v1418_v12, %v1350_v17  ;;  %v1219_v43 = vmul.f32 %v2113_v20, %v2807_v23  ;;  %v1303_v24 = vmul.f32 %v2115_v21, %v2809_v49  ;;  %v1319_v34 = vmul.f32 %v2115_v21, %v2815_v45 }
 0x1e4   : > { %v1472_v6 = vadd.f32 %v2780_v62, %v1434_v55  ;;  %v1034_v32 = vadd.f32 %v1002_v41, %v934_v4  ;;  %v1403_v33 = vmul.f32 %v2119_v25, %v2817_v11  ;;  %v1050_v7 = vadd.f32 %v1018_v16, %v950_v58  ;;  %v2857_v4 = vld [vmem:[#allocation2 + $0x188] sm:$0xff] }
 0x1e5   : > { %v1488_v38 = vadd.f32 %v2780_v62, %v1450_v10  ;;  %v1419_v12 = vmul.f32 %v2119_v25, %v2823_v36  ;;  %v603_v50 = vmul.f32 %v2639_v52, %v2081_v47  ;;  %v619_v37 = vmul.f32 %v2641_v30, %v2081_v47 }
 0x1e6   : > { %v1504_v42 = vmax.f32 %v1472_v6, 0.0  ;;  %v1134_v53 = vadd.f32 %v1102_v56, %v1034_v32  ;;  %v703_v22 = vmul.f32 %v2647_v28, %v2083_v48  ;;  %v1150_v59 = vadd.f32 %v1118_v31, %v1050_v7  ;;  %v2853_v56 = vld [vmem:[#allocation2 + $0xc8] sm:$0xff] }
 0x1e7   : > { %1805 = vxpose.xlu0.b32.cont [11/16] (narrow) %v1804_v26, 32  ;;  %v1520_v19 = vmax.f32 %v1488_v38, 0.0  ;;  %v719_v0 = vmul.f32 %v2649_v8, %v2083_v48  ;;  %v803_v46 = vmul.f32 %v2655_v35, %v2087_v54  ;;  %v819_v52 = vmul.f32 %v2657_v51, %v2087_v54  ;;  %v2859_v31 = vld [vmem:[#allocation2 + $0xc9] sm:$0xff] }
 0x1e8   : > { %v1235_v41 = vadd.f32 %v1203_v61, %v1134_v53  ;;  %v735_v17 = vadd.f32 %v703_v22, %v603_v50  ;;  %v903_v26 = vmul.f32 %v2743_v60, %v2098_v3  ;;  %v1251_v27 = vadd.f32 %v1219_v43, %v1150_v59  ;;  %v2865_v43 = vld [vmem:[#allocation2 + $0x189] sm:$0xff] }
 0x1e9   : > { %v1806_v30 = vpack.i.bf16 %v1504_v42, %v1520_v19  ;;  %v751_v16 = vadd.f32 %v719_v0, %v619_v37  ;;  %v919_v28 = vmul.f32 %v2750_v57, %v2098_v3  ;;  %v1003_v35 = vmul.f32 %v2754_v15, %v2105_v9 }
 0x1ea   : > { %v1335_v8 = vadd.f32 %v1303_v24, %v1235_v41  ;;  %v835_v55 = vadd.f32 %v803_v46, %v735_v17  ;;  %v1351_v51 = vadd.f32 %v1319_v34, %v1251_v27  ;;  %v1019_v10 = vmul.f32 %v2756_v63, %v2105_v9  ;;  %v2867_v24 = vld [vmem:[#allocation2 + $0xca] sm:$0xff] }
 0x1eb   : > { %1807 = vxpose.xlu0.b32.cont [12/16] (narrow) %v1806_v30, 32  ;;  %v851_v61 = vadd.f32 %v819_v52, %v751_v16  ;;  %v1103_v58 = vmul.f32 %v2758_v5, %v2109_v14  ;;  %v1119_v38 = vmul.f32 %v2766_v39, %v2109_v14  ;;  %v1204_v7 = vmul.f32 %v2113_v20, %v2853_v56  ;;  %v2887_v52 = vld [vmem:[#allocation2 + $0x18a] sm:$0xff] }
 0x1ec   : > { %v1435_v6 = vadd.f32 %v1403_v33, %v1335_v8  ;;  %v935_v32 = vadd.f32 %v903_v26, %v835_v55  ;;  %v1451_v34 = vadd.f32 %v1419_v12, %v1351_v51  ;;  %v1220_v42 = vmul.f32 %v2113_v20, %v2857_v4 }
 0x1ed   : > { %v951_v50 = vadd.f32 %v919_v28, %v851_v61  ;;  %v1304_v53 = vmul.f32 %v2115_v21, %v2859_v31  ;;  %v1320_v33 = vmul.f32 %v2115_v21, %v2865_v43  ;;  %v1404_v19 = vmul.f32 %v2119_v25, %v2867_v24 }
 0x1ee   : > { %v1473_v37 = vadd.f32 %v2780_v62, %v1435_v6  ;;  %v1035_v22 = vadd.f32 %v1003_v35, %v935_v32  ;;  %v1489_v59 = vadd.f32 %v2780_v62, %v1451_v34  ;;  %v604_v12 = vmul.f32 %v2691_v2, %v2081_v47  ;;  %v1185_v32 = vld [vmem:[#allocation2 + $0x198] sm:$0xff] }
 0x1ef   : > { %v1051_v0 = vadd.f32 %v1019_v10, %v951_v50  ;;  %v620_v46 = vmul.f32 %v2697_v29, %v2081_v47  ;;  %v704_v26 = vmul.f32 %v2699_v44, %v2083_v48  ;;  %v720_v30 = vmul.f32 %v2705_v13, %v2083_v48  ;;  %v1169_v10 = vld [vmem:[#allocation2 + $0xd8] sm:$0xff] }
 0x1f0   : > { %v1505_v41 = vmax.f32 %v1473_v37, 0.0  ;;  %v1135_v17 = vadd.f32 %v1103_v58, %v1035_v22  ;;  %v1521_v27 = vmax.f32 %v1489_v59, 0.0  ;;  %v804_v28 = vmul.f32 %v2707_v40, %v2087_v54 }
 0x1f1   : > { %v1151_v16 = vadd.f32 %v1119_v38, %v1051_v0  ;;  %v820_v2 = vmul.f32 %v2714_v1, %v2087_v54  ;;  %v736_v29 = vadd.f32 %v704_v26, %v604_v12  ;;  %v752_v55 = vadd.f32 %v720_v30, %v620_v46  ;;  %v1269_v38 = vld [vmem:[#allocation2 + $0xd9] sm:$0xff] }
 0x1f2   : > { %v1236_v8 = vadd.f32 %v1204_v7, %v1135_v17  ;;  %v904_v35 = vmul.f32 %v2801_v18, %v2098_v3  ;;  %v1808_v51 = vpack.i.bf16 %v1505_v41, %v1521_v27  ;;  %v1420_v44 = vmul.f32 %v2119_v25, %v2887_v52  ;;  %v1285_v7 = vld [vmem:[#allocation2 + $0x199] sm:$0xff] }
 0x1f3   : > { %v1252_v61 = vadd.f32 %v1220_v42, %v1151_v16  ;;  %v920_v13 = vmul.f32 %v2807_v23, %v2098_v3  ;;  %v836_v40 = vadd.f32 %v804_v28, %v736_v29  ;;  %v852_v6 = vadd.f32 %v820_v2, %v752_v55  ;;  %v1385_v42 = vld [vmem:[#allocation2 + $0x19a] sm:$0xff] }
 0x1f4   : > { %v1336_v58 = vadd.f32 %v1304_v53, %v1236_v8  ;;  %v1020_v1 = vmul.f32 %v2815_v45, %v2105_v9  ;;  %1809 = vxpose.xlu0.b32.cont [13/16] (narrow) %v1808_v51, 32  ;;  %v1004_v34 = vmul.f32 %v2809_v49, %v2105_v9  ;;  %v1104_v50 = vmul.f32 %v2817_v11, %v2109_v14  ;;  %v1369_v28 = vld [vmem:[#allocation2 + $0xda] sm:$0xff] }
 0x1f5   : > { %v1352_v18 = vadd.f32 %v1320_v33, %v1252_v61  ;;  %v1120_v23 = vmul.f32 %v2823_v36, %v2109_v14  ;;  %v936_v37 = vadd.f32 %v904_v35, %v836_v40  ;;  %v952_v22 = vadd.f32 %v920_v13, %v852_v6 }
 0x1f6   : > { %v1436_v53 = vadd.f32 %v1404_v19, %v1336_v58  ;;  %v1205_v45 = vmul.f32 %v2113_v20, %v1169_v10  ;;  %v1221_v0 = vmul.f32 %v2113_v20, %v1185_v32  ;;  %v1305_v33 = vmul.f32 %v2115_v21, %v1269_v38  ;;  %v1186_v58 = vld [vmem:[#allocation2 + $0x1a0] sm:$0xff] }
 0x1f7   : > { %v1452_v59 = vadd.f32 %v1420_v44, %v1352_v18  ;;  %v1321_v12 = vmul.f32 %v2115_v21, %v1285_v7  ;;  %v1036_v46 = vadd.f32 %v1004_v34, %v936_v37  ;;  %v1052_v11 = vadd.f32 %v1020_v1, %v952_v22  ;;  %v1170_v32 = vld [vmem:[#allocation2 + $0xe0] sm:$0xff] }
 0x1f8   : > { %v1474_v49 = vadd.f32 %v2780_v62, %v1436_v53  ;;  %v1421_v41 = vmul.f32 %v2119_v25, %v1385_v42  ;;  %v605_v19 = vmul.f32 %v2743_v60, %v2081_v47  ;;  %v621_v17 = vmul.f32 %v2750_v57, %v2081_v47  ;;  %v1286_v38 = vld [vmem:[#allocation2 + $0x1a1] sm:$0xff] }
 0x1f9   : > { %v1490_v36 = vadd.f32 %v2780_v62, %v1452_v59  ;;  %v705_v26 = vmul.f32 %v2754_v15, %v2083_v48  ;;  %v1136_v27 = vadd.f32 %v1104_v50, %v1036_v46  ;;  %v1152_v16 = vadd.f32 %v1120_v23, %v1052_v11  ;;  %v1386_v23 = vld [vmem:[#allocation2 + $0x1a2] sm:$0xff] }
 0x1fa   : > { %v1506_v30 = vmax.f32 %v1474_v49, 0.0  ;;  %v721_v2 = vmul.f32 %v2756_v63, %v2083_v48  ;;  %v805_v55 = vmul.f32 %v2758_v5, %v2087_v54  ;;  %v821_v60 = vmul.f32 %v2766_v39, %v2087_v54  ;;  %v1370_v22 = vld [vmem:[#allocation2 + $0xe2] sm:$0xff] }
 0x1fb   : > { %v1522_v8 = vmax.f32 %v1490_v36, 0.0  ;;  %v737_v29 = vadd.f32 %v705_v26, %v605_v19  ;;  %v1237_v35 = vadd.f32 %v1205_v45, %v1136_v27  ;;  %v1253_v47 = vadd.f32 %v1221_v0, %v1152_v16 }
 0x1fc   : > { %v753_v57 = vadd.f32 %v721_v2, %v621_v17  ;;  %v905_v15 = vmul.f32 %v2853_v56, %v2098_v3  ;;  %v1405_v61 = vmul.f32 %v2119_v25, %v1369_v28  ;;  %v921_v48 = vmul.f32 %v2857_v4, %v2098_v3 }
 0x1fd   : > { %v1810_v51 = vpack.i.bf16 %v1506_v30, %v1522_v8  ;;  %v837_v44 = vadd.f32 %v805_v55, %v737_v29  ;;  %v1337_v63 = vadd.f32 %v1305_v33, %v1237_v35  ;;  %v1353_v13 = vadd.f32 %v1321_v12, %v1253_v47 }
 0x1fe   : > { %v853_v10 = vadd.f32 %v821_v60, %v753_v57  ;;  %v1021_v5 = vmul.f32 %v2865_v43, %v2105_v9  ;;  %v1005_v39 = vmul.f32 %v2859_v31, %v2105_v9  ;;  %v1121_v1 = vmul.f32 %v2887_v52, %v2109_v14  ;;  %v1270_v31 = vld [vmem:[#allocation2 + $0xe1] sm:$0xff] }
 0x1ff   : > { %1811 = vxpose.xlu0.b32.cont [14/16] (narrow) %v1810_v51, 32  ;;  %v937_v54 = vadd.f32 %v905_v15, %v837_v44  ;;  %v1437_v56 = vadd.f32 %v1405_v61, %v1337_v63  ;;  %v1453_v40 = vadd.f32 %v1421_v41, %v1353_v13  ;;  %v1105_v4 = vmul.f32 %v2867_v24, %v2109_v14  ;;  %v338_v15 = vld [vmem:[%s3004_s5] sm:$0xf]  ;;  %v1596_v51 = vpop.permute.xlu1 %1595 }
 0x200   : > { %v953_v6 = vadd.f32 %v921_v48, %v853_v10  ;;  %v1222_v9 = vmul.f32 %v2113_v20, %v1186_v58  ;;  %v1206_v50 = vmul.f32 %v2113_v20, %v1170_v32  ;;  %v1322_v37 = vmul.f32 %v2115_v21, %v1286_v38  ;;  %v1839_v63 = vld [vmem:[%s2008_s23] sm:$0xff] }
 0x201   : > { %v1037_v3 = vadd.f32 %v1005_v39, %v937_v54  ;;  %v1475_v43 = vadd.f32 %v2780_v62, %v1437_v56  ;;  %v1491_v7 = vadd.f32 %v2780_v62, %v1453_v40  ;;  %v1306_v24 = vmul.f32 %v2115_v21, %v1270_v31  ;;  %v1840_v54 = vld [vmem:[%s2008_s23 + $0x8] sm:$0xff] }
 0x202   : > { %v1053_v18 = vadd.f32 %v1021_v5, %v953_v6  ;;  %v1422_v0 = vmul.f32 %v2119_v25, %v1386_v23  ;;  %v1406_v12 = vmul.f32 %v2119_v25, %v1370_v22 }
 0x203   : > { %v1137_v34 = vadd.f32 %v1105_v4, %v1037_v3  ;;  %v1507_v42 = vmax.f32 %v1475_v43, 0.0  ;;  %v1523_v52 = vmax.f32 %v1491_v7, 0.0 }
 0x204   : > { %v1153_v53 = vadd.f32 %v1121_v1, %v1053_v18 }
 0x205   : > { %v1238_v14 = vadd.f32 %v1206_v50, %v1137_v34  ;;  %v1812_v45 = vpack.i.bf16 %v1507_v42, %v1523_v52 }
 0x206   : > { %v1254_v59 = vadd.f32 %v1222_v9, %v1153_v53 }
 0x207   : > { %v1338_v33 = vadd.f32 %v1306_v24, %v1238_v14  ;;  %1813 = vxpose.xlu0.b32.cont [15/16] (narrow) %v1812_v45, 32 }
 0x208   : > { %v1354_v49 = vadd.f32 %v1322_v37, %v1254_v59 }
 0x209   : > { %v1438_v20 = vadd.f32 %v1406_v12, %v1338_v33 }
 0x20a   : > { %v1454_v46 = vadd.f32 %v1422_v0, %v1354_v49 }
 0x20b   : > { %v1476_v11 = vadd.f32 %v2780_v62, %v1438_v20 }
 0x20c   : > { %v1492_v41 = vadd.f32 %v2780_v62, %v1454_v46 }
 0x20d   : > { %v1508_v36 = vmax.f32 %v1476_v11, 0.0 }
 0x20e   : > { %v1524_v19 = vmax.f32 %v1492_v41, 0.0 }
 0x210   : > { %v1814_v17 = vpack.i.bf16 %v1508_v36, %v1524_v19 }
 0x212   : > { %1815 = vxpose.xlu0.b32.end [16/16] (narrow) %v1814_v17, 32 }
 0x252   : > { %v1816_v21 = vpop.trf.xlu0 }
 0x253   : > { %v1817_v29 = vunpack.i.l.bf16 %v1816_v21  ;;  %v1820_v47 = vunpack.i.h.bf16 %v1816_v21 }
 0x256   : > { %v1821_v26 = vpop.trf.xlu0 }
 0x257   : > { %v1822_v27 = vunpack.i.l.bf16 %v1821_v26  ;;  %v1825_v35 = vunpack.i.h.bf16 %v1821_v26 }
 0x259   : > { %v1590_v62 = vpack.c.bf16 %v1822_v27, %v1817_v29  ;;  %v1589_v57 = vpack.c.bf16 %v1825_v35, %v1820_v47 }
 0x25a   : > { %v1826_v30 = vpop.trf.xlu0 }
 0x25b   : > { %v1827_v28 = vunpack.i.l.bf16 %v1826_v30  ;;  %v1830_v2 = vunpack.i.h.bf16 %v1826_v30 }
 0x25e   : > { %v1831_v16 = vpop.trf.xlu0 }
 0x25f   : > { %v1832_v25 = vunpack.i.l.bf16 %v1831_v16  ;;  %v1835_v8 = vunpack.i.h.bf16 %v1831_v16 }
 0x261   : > { %v1592_v55 = vpack.c.bf16 %v1832_v25, %v1827_v28  ;;  %v1591_v60 = vpack.c.bf16 %v1835_v8, %v1830_v2 }
 0x263   : > { %1613 = vmatprep.subr.bf16.mxu1 %v1592_v55 }
 0x264   : > { %1614 = vmatpush1.bf16.msra.mxu1 %v1591_v60 }
 0x265   : > { %1615 = vmatprep.subr.bf16.mxu1 %v1590_v62 }
 0x268   : > { %1616 = vmatpush1.bf16.msra.mxu1 %v1589_v57 }
 0x26b   : > { %1733 = vmatmul.mubr.msk.bf16.vlgmr.msra.gmra.mxu1 %vm278_vm2, %v338_v15 }
 0x32b   : > { %v1635_v61 = vpop.f32.mrf.mxu1 }
 0x32c   : > { %v1636_v44 = vadd.f32 %v1635_v61, %v1596_v51 }
 0x32d   : > { %v1637_v48 = vpop.f32.mrf.mxu1 }
 0x32e   : > { %v1642_v13 = vadd.f32 %v1839_v63, %v1636_v44  ;;  %v1638_v10 = vadd.f32 %v1637_v48, %v1596_v51 }
 0x32f   : > { %v1639_v5 = vpop.f32.mrf.mxu1 }
 0x330   : > { %1644 = vst [vmem:[%s271_s20] sm:$0xff] %v1642_v13  ;;  %v1643_v39 = vadd.f32 %v1840_v54, %v1638_v10 }
 0x331   : > { %v1640_v58 = vpop.f32.mrf.mxu1 }
 0x332   : > { %1645 = vst [vmem:[%s271_s20 + $0x8] sm:$0xff] %v1643_v39 }
 0x333   : > { %1854 = shalt.err (!%p1851_p3)
}
 0x334   : > { %s1855_s23 = scalar_lea.hbm %s2964_s8, 256  ;;  %s1859_s18 = scalar_lea.hbm %s3006_s7, 512 }
 0x335   : > { %p1856_p4 = scmp.ne.s32.totalorder %s2964_s8, %s1855_s23  ;;  %p1860_p9 = scmp.lt.s32.totalorder %s2964_s8, %s3006_s7 }
 0x336   : > { %p1861_p10 = scmp.lt.s32.totalorder %s1859_s18, %s1855_s23 }
 0x337   : > { %p1857_p7 = pnand %p1856_p4, %p1984_p5 }
 0x338   : > { %p1862_p11 = por %p1861_p10, %p1860_p9 }
 0x339   : > { %p1858_p8 = pneg %p1857_p7 }
 0x33b   : > { %p1863_p12 = pnand %p1862_p11, %p1858_p8 }
 0x33d   : > { %1866 = shalt.err (!%p1863_p12)
}
 0x33e   : > { %1741 = dma.vmem_to_hbm [thread:$0]  (%p1984_p5), %s1662_s21, 256, %s2964_s8, %s1647_s9  }
 0x33f PF: > { %p1747_p13 = scmp.ge.s32.totalorder %s1901_s27, 2  ;;  %s1673_s22 = sand.u32 1, %s1889_s24  }
 0x340   : > { %s1674_s29 = scalar_lea.sflag [#allocation4], %s1673_s22 }
 0x341   : > { %p1744_p0 = pnand %p1747_p13, %p1988_p6 }
 0x343   : > { %p1745_p1 = pneg %p1744_p0 }
 0x345   : > { %1884 = dma.done.wait (%p1745_p1), %s1674_s29, 256  }
 0x346   : > { %1886 = vsyncadd (%p1745_p1), %s1674_s29, 4294967040  ;;  %p17_p2 = scmp.ge.s32.totalorder %s1971_s30, 4   ;;  %s3051_s24 = smov %s1893_s25 }
 0x347   : > { %s3052_s25 = smov %s1897_s26  ;;  %s3053_s26 = smov %s1982_s10 }
 0x348   : > { %s3054_s27 = smov %s1971_s30  ;;  %19 = sbr.rel (!%p17_p2) target bundleno = 3 (0x3), region = 85 }
 0x34d   :  { %1679 = vsyncpa [#allocation4], 1 }
 0x34e   :  { %1681 = vsyncpa [#allocation4 + $0x1], 1 }

</bundles_post_ra>
